<compile_context>
chip_gen: v7x
topology: tpu7x:2x2x1
jax: 0.10.0
libtpu: 0.0.40
codegen_flags: <defaults>
</compile_context>

<pallas_src>
import functools

import jax
import jax.numpy as jnp
from jax import lax
from jax.experimental import pallas as pl
from jax.experimental.pallas import tpu as pltpu

EPS_MIN = 1e-10
EPS_MAX = 1.0 - 1e-10
LANES = 128


def _round_up(x, m):
    return ((x + m - 1) // m) * m


# ---------------------------------------------------------------------------
# Parameter derivation (matches PiecewiseQuadratic.derive_params, net=None)
# ---------------------------------------------------------------------------
def derive_params(width_p, v_node_p, beta=1.0, width_min=0.0):
    width = jax.nn.softmax(beta * width_p, axis=-1)
    width = jnp.maximum(width, width_min)                       # torch.clamp(w, width_min)
    width = width / jnp.sum(width, axis=-1, keepdims=True)

    # x_node[..., 0] = 0, x_node[..., 1:] = cumsum(width)
    x_node = jnp.concatenate(
        [jnp.zeros_like(v_node_p[..., :1]), jnp.cumsum(width, axis=-1)], axis=-1)

    # y_node[..., 0] = -inf, y_node[..., 1:] = logcumsumexp(logaddexp(v0, v1) + log(w/2))
    tmp = jnp.logaddexp(v_node_p[..., :-1], v_node_p[..., 1:]) + jnp.log(0.5 * width)
    # NOTE: lax.cumlogsumexp rejects negative axes -> pass the positive axis.
    y_node = jnp.concatenate(
        [jnp.full_like(v_node_p[..., :1], -jnp.inf),
         lax.cumlogsumexp(tmp, axis=tmp.ndim - 1)],
        axis=-1)

    y_norm = y_node[..., -1:]
    y_node = jnp.exp(y_node - y_norm)
    v_node = jnp.exp(v_node_p - y_norm)
    return width, x_node, y_node, v_node


def _prepare_kernel_params(width_p, v_node_p, beta=1.0, width_min=0.0):
    """Batch-independent prep, pre-broadcast across the 128-lane axis.

    Per (dim, bin) the kernel only needs 4 numbers:
      x_lo                   : bin lower edge (for the compare)
      a = 0.5*(v1-v0)/width  : quadratic coefficient on u = x - x_lo
      v0                     : linear coefficient / grad offset
      y_lo                   : constant offset
    so that x_out = (a*u + v0)*u + y_lo  and  grad = 2*a*u + v0.
    Stacked into one (4, n_bin, n_dim, 128) tensor whose last axis is the
    pre-broadcast lane axis -> zero per-bin lane broadcasts inside the kernel.
    """
    width, x_node, y_node, v_node = derive_params(width_p, v_node_p, beta, width_min)
    width, x_node, y_node, v_node = width[0], x_node[0], y_node[0], v_node[0]
    n_dim, n_bin = width.shape

    x_lo = x_node[:, :n_bin]
    y_lo = y_node[:, :n_bin]
    v0 = v_node[:, :n_bin]
    vd = v_node[:, 1:] - v0
    safe_w = jnp.where(width > 0.0, width, 1.0)
    # width == 0 bins have zero measure and are never selected by the compare.
    a = jnp.where(width > 0.0, 0.5 * vd / safe_w, 0.0)

    params = jnp.stack([x_lo, a, v0, y_lo], axis=0)          # (4, D, K)
    params = jnp.transpose(params, (0, 2, 1))                # (4, K, D)
    params = jnp.broadcast_to(params[..., None], (4, n_bin, n_dim, LANES))
    return jnp.asarray(params, jnp.float32)


# ---------------------------------------------------------------------------
# Pallas kernel
#   x_ref / xout_ref : (tb, n_dim) blocks of the untransposed (B, n_dim) arrays
#   ldj_ref          : (1, tb) lane-dense row of the (1, B) output
#   p_ref            : (4, n_bin, n_dim, 128) VMEM-resident stacked params
# Each 128-lane batch chunk is transposed in-kernel to (n_dim, 128) so the
# VALU math runs with batch on the lane axis at full vreg occupancy.
# ---------------------------------------------------------------------------
def _pwq_kernel(x_ref, p_ref, xout_ref, ldj_ref, *, n_bin, n_chunk, grad_bias):
    for c in range(n_chunk):                         # static 128-lane chunks
        lo = c * LANES
        # in-kernel transpose (XLU) -> (n_dim, 128), batch on lanes
        x = jnp.clip(x_ref[pl.ds(lo, LANES), :].astype(jnp.float32).T,
                     EPS_MIN, EPS_MAX)

        # monotone bin-edge compares, each computed exactly once
        cmps = [x > p_ref[0, k, :, :] for k in range(n_bin)]

        x_out = jnp.zeros_like(x)
        grad = jnp.zeros_like(x)
        for k in range(n_bin):
            # exactly one bin is active: cmp_k & ~cmp_{k+1} (== xor, monotone);
            # cmp_{n_bin} is identically False, which also clamps x past the
            # last node into the last bin (matches searchsorted + clamp).
            active = cmps[k] if k == n_bin - 1 else cmps[k] ^ cmps[k + 1]

            x_lo = p_ref[0, k, :, :]
            a = p_ref[1, k, :, :]
            v0 = p_ref[2, k, :, :]
            y_lo = p_ref[3, k, :, :]

            u = x - x_lo
            t = a * u
            xo_k = (t + v0) * u + y_lo           # w*(v0*xl + 0.5*vd*xl^2) + y_lo
            g_k = t + t + v0                     # v0 + vd*xl

            x_out = jnp.where(active, xo_k, x_out)   # select-only accumulation
            grad = jnp.where(active, g_k, grad)

        # every inactive bin contributed eps_min in the torch code
        grad = jnp.maximum(grad + grad_bias, EPS_MIN)

        xout_ref[pl.ds(lo, LANES), :] = x_out.T.astype(xout_ref.dtype)
        ldj_ref[:, pl.ds(lo, LANES)] = jnp.sum(jnp.log(grad), axis=0, keepdims=True)


# ---------------------------------------------------------------------------
# Wrapper (module layout in, module layout out; no HBM transposes anywhere)
# ---------------------------------------------------------------------------
def piecewise_quadratic_forward(x_in, width_p, v_node_p, *, beta=1.0,
                                width_min=0.0, tb=2048):
    params = _prepare_kernel_params(width_p, v_node_p, beta, width_min)
    batch, n_dim = x_in.shape
    n_bin = width_p.shape[-1]

    # ---- batch-tile selection ------------------------------------------------
    pb = _round_up(batch, LANES)
    tb = min(max(LANES, (tb // LANES) * LANES), pb)
    if pb >= 2 * LANES:
        # v7x: keep >= 2 "parallel" grid steps so both TensorCores get work.
        tb = min(tb, _round_up(pb // 2, LANES))
    pb = _round_up(batch, tb)

    x = jnp.asarray(x_in, jnp.float32)
    if pb != batch:
        # ragged batch: pad with an in-range dummy; padded rows are discarded.
        x = jnp.pad(x, ((0, pb - batch), (0, 0)), constant_values=0.5)

    grid = (pb // tb,)
    kernel = functools.partial(_pwq_kernel, n_bin=n_bin, n_chunk=tb // LANES,
                               grad_bias=(n_bin - 1) * EPS_MIN)

    # VMEM footprint: double-buffered (tb, n_dim) in/out tiles + the 256 KiB
    # resident param stack -- ~1 MiB at tb=2048, far under every generation's
    # (v5e included) scoped-VMEM default, so no vmem_limit_bytes override.
    x_out, ldj = pl.pallas_call(
        kernel,
        out_shape=(
            jax.ShapeDtypeStruct((pb, n_dim), jnp.float32),   # module layout
            jax.ShapeDtypeStruct((1, pb), jnp.float32),       # lane-dense ldj
        ),
        grid=grid,
        in_specs=[
            pl.BlockSpec((tb, n_dim), lambda b: (b, 0)),
            pl.BlockSpec((4, n_bin, n_dim, LANES), lambda b: (0, 0, 0, 0)),
        ],
        out_specs=(
            pl.BlockSpec((tb, n_dim), lambda b: (b, 0)),
            pl.BlockSpec((1, tb), lambda b: (0, b)),
        ),
        compiler_params=pltpu.CompilerParams(dimension_semantics=("parallel",)),
    )(x, params)

    # (1, pb) -> (pb, 1) is a free row-major reshape (no transpose, no HBM pass)
    ldj = ldj.reshape(pb, 1)
    if pb != batch:
        x_out = x_out[:batch]
        ldj = ldj[:batch]
    return x_out, ldj


# ---------------------------------------------------------------------------
# Pure-JAX reference (direct transcription of the torch forward) for checking
# ---------------------------------------------------------------------------
def reference_forward(x_in, width_p, v_node_p, *, beta=1.0, width_min=0.0):
    n_bin = width_p.shape[-1]
    x = jnp.clip(x_in, EPS_MIN, EPS_MAX)
    width, x_node, y_node, v_node = derive_params(width_p, v_node_p, beta, width_min)
    v_0, v_1 = v_node[..., :-1], v_node[..., 1:]
    xb = x[..., None]
    x_local = (xb - x_node[..., :-1]) / width
    x_local = jnp.where(width == 0.0, 0.5, x_local)
    cnt = jnp.sum((x_node < xb).astype(jnp.int32), axis=-1)
    inds = jnp.clip(cnt - 1, 0, n_bin - 1)
    active = jax.nn.one_hot(inds, n_bin, dtype=jnp.bool_)
    x_out = width * (v_0 * x_local + 0.5 * (v_1 - v_0) * x_local * x_local) + y_node[..., :-1]
    x_out = jnp.where(active, x_out, 0.0).sum(axis=-1)
    grad = v_0 + (v_1 - v_0) * x_local
    grad = jnp.where(active, grad, EPS_MIN).sum(axis=-1)
    grad = jnp.maximum(grad, EPS_MIN)
    ldj = jnp.log(grad).sum(axis=-1, keepdims=True)
    return x_out, ldj


if __name__ == "__main__":
    n_dim, n_bin, batch = 16, 8, 512

    key = jax.random.PRNGKey(0)
    k_w, k_v, k_x = jax.random.split(key, 3)
    # nn.Parameter(torch.rand(1, n_dim, n_bin))
    width_param = jax.random.uniform(k_w, (1, n_dim, n_bin), dtype=jnp.float32)
    # nn.Parameter(torch.randn(1, n_dim, n_bin + 1))
    v_node_param = jax.random.normal(k_v, (1, n_dim, n_bin + 1), dtype=jnp.float32)
    # flow input lives in (0, 1)
    x_in = jax.random.uniform(k_x, (batch, n_dim), dtype=jnp.float32)

    # default tb=2048 gets capped to 256 here so the grid still has 2
    # "parallel" steps (v7x dual-TensorCore) at this small demo batch.
    x_out, log_det_jac = piecewise_quadratic_forward(x_in, width_param, v_node_param)
    jax.block_until_ready((x_out, log_det_jac))

    x_ref, ldj_ref = reference_forward(x_in, width_param, v_node_param)
    assert x_out.shape == (batch, n_dim) and log_det_jac.shape == (batch, 1)
    assert jnp.allclose(x_out, x_ref, rtol=1e-5, atol=1e-5)
    assert jnp.allclose(log_det_jac, ldj_ref, rtol=1e-5, atol=1e-5)

    # TODO(synk): the `net is not None` (coupler network) branch and reverse()
    # are not implemented; only the parametric forward pass is kernelized.
    print("KERNEL_OK")
</pallas_src>

<mosaic_0001>
module attributes {stable_mosaic.version = 11 : i64} {
  func.func @_pwq_kernel(%arg0: i32, %arg1: memref<256x16xf32, #tpu.memory_space<vmem>>, %arg2: memref<4x8x16x128xf32, #tpu.memory_space<vmem>>, %arg3: memref<256x16xf32, #tpu.memory_space<vmem>>, %arg4: memref<1x256xf32, #tpu.memory_space<vmem>>) attributes {dimension_semantics = [#tpu.dimension_semantics<parallel>], iteration_bounds = array<i64: 2>, scalar_prefetch = 0 : i64, scratch_operands = 0 : i64, tpu.core_type = #tpu.core_type<tc>, window_params = [{transform_indices = @transform_0, window_bounds = array<i64: 256, 16>}, {pipeline_mode = #tpu.pipeline_mode<synchronous>, transform_indices = @transform_1, window_bounds = array<i64: 4, 8, 16, 128>}, {transform_indices = @transform_2, window_bounds = array<i64: 256, 16>}, {transform_indices = @transform_3, window_bounds = array<i64: 1, 256>}]} {
    %c0 = arith.constant 0 : index
    %c0_0 = arith.constant 0 : index
    %0 = vector.load %arg1[%c0, %c0_0] : memref<256x16xf32, #tpu.memory_space<vmem>>, vector<128x16xf32>
    %1 = tpu.transpose %0, [1, 0] : vector<128x16xf32> -> vector<16x128xf32>
    %cst = arith.constant 1.000000e-10 : f32
    %cst_1 = arith.constant 1.000000e+00 : f32
    %2 = vector.broadcast %cst : f32 to vector<16x128xf32>
    %3 = arith.maximumf %2, %1 : vector<16x128xf32>
    %4 = vector.broadcast %cst_1 : f32 to vector<16x128xf32>
    %5 = arith.minimumf %4, %3 : vector<16x128xf32>
    %c0_2 = arith.constant 0 : index
    %c0_3 = arith.constant 0 : index
    %c0_4 = arith.constant 0 : index
    %c0_5 = arith.constant 0 : index
    %6 = vector.load %arg2[%c0_2, %c0_3, %c0_4, %c0_5] : memref<4x8x16x128xf32, #tpu.memory_space<vmem>>, vector<1x1x16x128xf32>
    %7 = vector.shape_cast %6 : vector<1x1x16x128xf32> to vector<16x128xf32>
    %8 = arith.cmpf ogt, %5, %7 : vector<16x128xf32>
    %c0_6 = arith.constant 0 : index
    %c1 = arith.constant 1 : index
    %c0_7 = arith.constant 0 : index
    %c0_8 = arith.constant 0 : index
    %9 = vector.load %arg2[%c0_6, %c1, %c0_7, %c0_8] : memref<4x8x16x128xf32, #tpu.memory_space<vmem>>, vector<1x1x16x128xf32>
    %10 = vector.shape_cast %9 : vector<1x1x16x128xf32> to vector<16x128xf32>
    %11 = arith.cmpf ogt, %5, %10 : vector<16x128xf32>
    %c0_9 = arith.constant 0 : index
    %c2 = arith.constant 2 : index
    %c0_10 = arith.constant 0 : index
    %c0_11 = arith.constant 0 : index
    %12 = vector.load %arg2[%c0_9, %c2, %c0_10, %c0_11] : memref<4x8x16x128xf32, #tpu.memory_space<vmem>>, vector<1x1x16x128xf32>
    %13 = vector.shape_cast %12 : vector<1x1x16x128xf32> to vector<16x128xf32>
    %14 = arith.cmpf ogt, %5, %13 : vector<16x128xf32>
    %c0_12 = arith.constant 0 : index
    %c3 = arith.constant 3 : index
    %c0_13 = arith.constant 0 : index
    %c0_14 = arith.constant 0 : index
    %15 = vector.load %arg2[%c0_12, %c3, %c0_13, %c0_14] : memref<4x8x16x128xf32, #tpu.memory_space<vmem>>, vector<1x1x16x128xf32>
    %16 = vector.shape_cast %15 : vector<1x1x16x128xf32> to vector<16x128xf32>
    %17 = arith.cmpf ogt, %5, %16 : vector<16x128xf32>
    %c0_15 = arith.constant 0 : index
    %c4 = arith.constant 4 : index
    %c0_16 = arith.constant 0 : index
    %c0_17 = arith.constant 0 : index
    %18 = vector.load %arg2[%c0_15, %c4, %c0_16, %c0_17] : memref<4x8x16x128xf32, #tpu.memory_space<vmem>>, vector<1x1x16x128xf32>
    %19 = vector.shape_cast %18 : vector<1x1x16x128xf32> to vector<16x128xf32>
    %20 = arith.cmpf ogt, %5, %19 : vector<16x128xf32>
    %c0_18 = arith.constant 0 : index
    %c5 = arith.constant 5 : index
    %c0_19 = arith.constant 0 : index
    %c0_20 = arith.constant 0 : index
    %21 = vector.load %arg2[%c0_18, %c5, %c0_19, %c0_20] : memref<4x8x16x128xf32, #tpu.memory_space<vmem>>, vector<1x1x16x128xf32>
    %22 = vector.shape_cast %21 : vector<1x1x16x128xf32> to vector<16x128xf32>
    %23 = arith.cmpf ogt, %5, %22 : vector<16x128xf32>
    %c0_21 = arith.constant 0 : index
    %c6 = arith.constant 6 : index
    %c0_22 = arith.constant 0 : index
    %c0_23 = arith.constant 0 : index
    %24 = vector.load %arg2[%c0_21, %c6, %c0_22, %c0_23] : memref<4x8x16x128xf32, #tpu.memory_space<vmem>>, vector<1x1x16x128xf32>
    %25 = vector.shape_cast %24 : vector<1x1x16x128xf32> to vector<16x128xf32>
    %26 = arith.cmpf ogt, %5, %25 : vector<16x128xf32>
    %c0_24 = arith.constant 0 : index
    %c7 = arith.constant 7 : index
    %c0_25 = arith.constant 0 : index
    %c0_26 = arith.constant 0 : index
    %27 = vector.load %arg2[%c0_24, %c7, %c0_25, %c0_26] : memref<4x8x16x128xf32, #tpu.memory_space<vmem>>, vector<1x1x16x128xf32>
    %28 = vector.shape_cast %27 : vector<1x1x16x128xf32> to vector<16x128xf32>
    %29 = arith.cmpf ogt, %5, %28 : vector<16x128xf32>
    %cst_27 = arith.constant 0.000000e+00 : f32
    %30 = vector.broadcast %cst_27 : f32 to vector<16x128xf32>
    %cst_28 = arith.constant 0.000000e+00 : f32
    %31 = vector.broadcast %cst_28 : f32 to vector<16x128xf32>
    %32 = arith.xori %8, %11 : vector<16x128xi1>
    %c0_29 = arith.constant 0 : index
    %c0_30 = arith.constant 0 : index
    %c0_31 = arith.constant 0 : index
    %c0_32 = arith.constant 0 : index
    %33 = vector.load %arg2[%c0_29, %c0_30, %c0_31, %c0_32] : memref<4x8x16x128xf32, #tpu.memory_space<vmem>>, vector<1x1x16x128xf32>
    %34 = vector.shape_cast %33 : vector<1x1x16x128xf32> to vector<16x128xf32>
    %c1_33 = arith.constant 1 : index
    %c0_34 = arith.constant 0 : index
    %c0_35 = arith.constant 0 : index
    %c0_36 = arith.constant 0 : index
    %35 = vector.load %arg2[%c1_33, %c0_34, %c0_35, %c0_36] : memref<4x8x16x128xf32, #tpu.memory_space<vmem>>, vector<1x1x16x128xf32>
    %36 = vector.shape_cast %35 : vector<1x1x16x128xf32> to vector<16x128xf32>
    %c2_37 = arith.constant 2 : index
    %c0_38 = arith.constant 0 : index
    %c0_39 = arith.constant 0 : index
    %c0_40 = arith.constant 0 : index
    %37 = vector.load %arg2[%c2_37, %c0_38, %c0_39, %c0_40] : memref<4x8x16x128xf32, #tpu.memory_space<vmem>>, vector<1x1x16x128xf32>
    %38 = vector.shape_cast %37 : vector<1x1x16x128xf32> to vector<16x128xf32>
    %c3_41 = arith.constant 3 : index
    %c0_42 = arith.constant 0 : index
    %c0_43 = arith.constant 0 : index
    %c0_44 = arith.constant 0 : index
    %39 = vector.load %arg2[%c3_41, %c0_42, %c0_43, %c0_44] : memref<4x8x16x128xf32, #tpu.memory_space<vmem>>, vector<1x1x16x128xf32>
    %40 = vector.shape_cast %39 : vector<1x1x16x128xf32> to vector<16x128xf32>
    %41 = arith.subf %5, %34 : vector<16x128xf32>
    %42 = arith.mulf %36, %41 : vector<16x128xf32>
    %43 = arith.addf %42, %38 : vector<16x128xf32>
    %44 = arith.mulf %43, %41 : vector<16x128xf32>
    %45 = arith.addf %44, %40 : vector<16x128xf32>
    %46 = arith.addf %42, %42 : vector<16x128xf32>
    %47 = arith.addf %46, %38 : vector<16x128xf32>
    %48 = arith.select %32, %45, %30 : vector<16x128xi1>, vector<16x128xf32>
    %49 = arith.select %32, %47, %31 : vector<16x128xi1>, vector<16x128xf32>
    %50 = arith.xori %11, %14 : vector<16x128xi1>
    %c0_45 = arith.constant 0 : index
    %c1_46 = arith.constant 1 : index
    %c0_47 = arith.constant 0 : index
    %c0_48 = arith.constant 0 : index
    %51 = vector.load %arg2[%c0_45, %c1_46, %c0_47, %c0_48] : memref<4x8x16x128xf32, #tpu.memory_space<vmem>>, vector<1x1x16x128xf32>
    %52 = vector.shape_cast %51 : vector<1x1x16x128xf32> to vector<16x128xf32>
    %c1_49 = arith.constant 1 : index
    %c1_50 = arith.constant 1 : index
    %c0_51 = arith.constant 0 : index
    %c0_52 = arith.constant 0 : index
    %53 = vector.load %arg2[%c1_49, %c1_50, %c0_51, %c0_52] : memref<4x8x16x128xf32, #tpu.memory_space<vmem>>, vector<1x1x16x128xf32>
    %54 = vector.shape_cast %53 : vector<1x1x16x128xf32> to vector<16x128xf32>
    %c2_53 = arith.constant 2 : index
    %c1_54 = arith.constant 1 : index
    %c0_55 = arith.constant 0 : index
    %c0_56 = arith.constant 0 : index
    %55 = vector.load %arg2[%c2_53, %c1_54, %c0_55, %c0_56] : memref<4x8x16x128xf32, #tpu.memory_space<vmem>>, vector<1x1x16x128xf32>
    %56 = vector.shape_cast %55 : vector<1x1x16x128xf32> to vector<16x128xf32>
    %c3_57 = arith.constant 3 : index
    %c1_58 = arith.constant 1 : index
    %c0_59 = arith.constant 0 : index
    %c0_60 = arith.constant 0 : index
    %57 = vector.load %arg2[%c3_57, %c1_58, %c0_59, %c0_60] : memref<4x8x16x128xf32, #tpu.memory_space<vmem>>, vector<1x1x16x128xf32>
    %58 = vector.shape_cast %57 : vector<1x1x16x128xf32> to vector<16x128xf32>
    %59 = arith.subf %5, %52 : vector<16x128xf32>
    %60 = arith.mulf %54, %59 : vector<16x128xf32>
    %61 = arith.addf %60, %56 : vector<16x128xf32>
    %62 = arith.mulf %61, %59 : vector<16x128xf32>
    %63 = arith.addf %62, %58 : vector<16x128xf32>
    %64 = arith.addf %60, %60 : vector<16x128xf32>
    %65 = arith.addf %64, %56 : vector<16x128xf32>
    %66 = arith.select %50, %63, %48 : vector<16x128xi1>, vector<16x128xf32>
    %67 = arith.select %50, %65, %49 : vector<16x128xi1>, vector<16x128xf32>
    %68 = arith.xori %14, %17 : vector<16x128xi1>
    %c0_61 = arith.constant 0 : index
    %c2_62 = arith.constant 2 : index
    %c0_63 = arith.constant 0 : index
    %c0_64 = arith.constant 0 : index
    %69 = vector.load %arg2[%c0_61, %c2_62, %c0_63, %c0_64] : memref<4x8x16x128xf32, #tpu.memory_space<vmem>>, vector<1x1x16x128xf32>
    %70 = vector.shape_cast %69 : vector<1x1x16x128xf32> to vector<16x128xf32>
    %c1_65 = arith.constant 1 : index
    %c2_66 = arith.constant 2 : index
    %c0_67 = arith.constant 0 : index
    %c0_68 = arith.constant 0 : index
    %71 = vector.load %arg2[%c1_65, %c2_66, %c0_67, %c0_68] : memref<4x8x16x128xf32, #tpu.memory_space<vmem>>, vector<1x1x16x128xf32>
    %72 = vector.shape_cast %71 : vector<1x1x16x128xf32> to vector<16x128xf32>
    %c2_69 = arith.constant 2 : index
    %c2_70 = arith.constant 2 : index
    %c0_71 = arith.constant 0 : index
    %c0_72 = arith.constant 0 : index
    %73 = vector.load %arg2[%c2_69, %c2_70, %c0_71, %c0_72] : memref<4x8x16x128xf32, #tpu.memory_space<vmem>>, vector<1x1x16x128xf32>
    %74 = vector.shape_cast %73 : vector<1x1x16x128xf32> to vector<16x128xf32>
    %c3_73 = arith.constant 3 : index
    %c2_74 = arith.constant 2 : index
    %c0_75 = arith.constant 0 : index
    %c0_76 = arith.constant 0 : index
    %75 = vector.load %arg2[%c3_73, %c2_74, %c0_75, %c0_76] : memref<4x8x16x128xf32, #tpu.memory_space<vmem>>, vector<1x1x16x128xf32>
    %76 = vector.shape_cast %75 : vector<1x1x16x128xf32> to vector<16x128xf32>
    %77 = arith.subf %5, %70 : vector<16x128xf32>
    %78 = arith.mulf %72, %77 : vector<16x128xf32>
    %79 = arith.addf %78, %74 : vector<16x128xf32>
    %80 = arith.mulf %79, %77 : vector<16x128xf32>
    %81 = arith.addf %80, %76 : vector<16x128xf32>
    %82 = arith.addf %78, %78 : vector<16x128xf32>
    %83 = arith.addf %82, %74 : vector<16x128xf32>
    %84 = arith.select %68, %81, %66 : vector<16x128xi1>, vector<16x128xf32>
    %85 = arith.select %68, %83, %67 : vector<16x128xi1>, vector<16x128xf32>
    %86 = arith.xori %17, %20 : vector<16x128xi1>
    %c0_77 = arith.constant 0 : index
    %c3_78 = arith.constant 3 : index
    %c0_79 = arith.constant 0 : index
    %c0_80 = arith.constant 0 : index
    %87 = vector.load %arg2[%c0_77, %c3_78, %c0_79, %c0_80] : memref<4x8x16x128xf32, #tpu.memory_space<vmem>>, vector<1x1x16x128xf32>
    %88 = vector.shape_cast %87 : vector<1x1x16x128xf32> to vector<16x128xf32>
    %c1_81 = arith.constant 1 : index
    %c3_82 = arith.constant 3 : index
    %c0_83 = arith.constant 0 : index
    %c0_84 = arith.constant 0 : index
    %89 = vector.load %arg2[%c1_81, %c3_82, %c0_83, %c0_84] : memref<4x8x16x128xf32, #tpu.memory_space<vmem>>, vector<1x1x16x128xf32>
    %90 = vector.shape_cast %89 : vector<1x1x16x128xf32> to vector<16x128xf32>
    %c2_85 = arith.constant 2 : index
    %c3_86 = arith.constant 3 : index
    %c0_87 = arith.constant 0 : index
    %c0_88 = arith.constant 0 : index
    %91 = vector.load %arg2[%c2_85, %c3_86, %c0_87, %c0_88] : memref<4x8x16x128xf32, #tpu.memory_space<vmem>>, vector<1x1x16x128xf32>
    %92 = vector.shape_cast %91 : vector<1x1x16x128xf32> to vector<16x128xf32>
    %c3_89 = arith.constant 3 : index
    %c3_90 = arith.constant 3 : index
    %c0_91 = arith.constant 0 : index
    %c0_92 = arith.constant 0 : index
    %93 = vector.load %arg2[%c3_89, %c3_90, %c0_91, %c0_92] : memref<4x8x16x128xf32, #tpu.memory_space<vmem>>, vector<1x1x16x128xf32>
    %94 = vector.shape_cast %93 : vector<1x1x16x128xf32> to vector<16x128xf32>
    %95 = arith.subf %5, %88 : vector<16x128xf32>
    %96 = arith.mulf %90, %95 : vector<16x128xf32>
    %97 = arith.addf %96, %92 : vector<16x128xf32>
    %98 = arith.mulf %97, %95 : vector<16x128xf32>
    %99 = arith.addf %98, %94 : vector<16x128xf32>
    %100 = arith.addf %96, %96 : vector<16x128xf32>
    %101 = arith.addf %100, %92 : vector<16x128xf32>
    %102 = arith.select %86, %99, %84 : vector<16x128xi1>, vector<16x128xf32>
    %103 = arith.select %86, %101, %85 : vector<16x128xi1>, vector<16x128xf32>
    %104 = arith.xori %20, %23 : vector<16x128xi1>
    %c0_93 = arith.constant 0 : index
    %c4_94 = arith.constant 4 : index
    %c0_95 = arith.constant 0 : index
    %c0_96 = arith.constant 0 : index
    %105 = vector.load %arg2[%c0_93, %c4_94, %c0_95, %c0_96] : memref<4x8x16x128xf32, #tpu.memory_space<vmem>>, vector<1x1x16x128xf32>
    %106 = vector.shape_cast %105 : vector<1x1x16x128xf32> to vector<16x128xf32>
    %c1_97 = arith.constant 1 : index
    %c4_98 = arith.constant 4 : index
    %c0_99 = arith.constant 0 : index
    %c0_100 = arith.constant 0 : index
    %107 = vector.load %arg2[%c1_97, %c4_98, %c0_99, %c0_100] : memref<4x8x16x128xf32, #tpu.memory_space<vmem>>, vector<1x1x16x128xf32>
    %108 = vector.shape_cast %107 : vector<1x1x16x128xf32> to vector<16x128xf32>
    %c2_101 = arith.constant 2 : index
    %c4_102 = arith.constant 4 : index
    %c0_103 = arith.constant 0 : index
    %c0_104 = arith.constant 0 : index
    %109 = vector.load %arg2[%c2_101, %c4_102, %c0_103, %c0_104] : memref<4x8x16x128xf32, #tpu.memory_space<vmem>>, vector<1x1x16x128xf32>
    %110 = vector.shape_cast %109 : vector<1x1x16x128xf32> to vector<16x128xf32>
    %c3_105 = arith.constant 3 : index
    %c4_106 = arith.constant 4 : index
    %c0_107 = arith.constant 0 : index
    %c0_108 = arith.constant 0 : index
    %111 = vector.load %arg2[%c3_105, %c4_106, %c0_107, %c0_108] : memref<4x8x16x128xf32, #tpu.memory_space<vmem>>, vector<1x1x16x128xf32>
    %112 = vector.shape_cast %111 : vector<1x1x16x128xf32> to vector<16x128xf32>
    %113 = arith.subf %5, %106 : vector<16x128xf32>
    %114 = arith.mulf %108, %113 : vector<16x128xf32>
    %115 = arith.addf %114, %110 : vector<16x128xf32>
    %116 = arith.mulf %115, %113 : vector<16x128xf32>
    %117 = arith.addf %116, %112 : vector<16x128xf32>
    %118 = arith.addf %114, %114 : vector<16x128xf32>
    %119 = arith.addf %118, %110 : vector<16x128xf32>
    %120 = arith.select %104, %117, %102 : vector<16x128xi1>, vector<16x128xf32>
    %121 = arith.select %104, %119, %103 : vector<16x128xi1>, vector<16x128xf32>
    %122 = arith.xori %23, %26 : vector<16x128xi1>
    %c0_109 = arith.constant 0 : index
    %c5_110 = arith.constant 5 : index
    %c0_111 = arith.constant 0 : index
    %c0_112 = arith.constant 0 : index
    %123 = vector.load %arg2[%c0_109, %c5_110, %c0_111, %c0_112] : memref<4x8x16x128xf32, #tpu.memory_space<vmem>>, vector<1x1x16x128xf32>
    %124 = vector.shape_cast %123 : vector<1x1x16x128xf32> to vector<16x128xf32>
    %c1_113 = arith.constant 1 : index
    %c5_114 = arith.constant 5 : index
    %c0_115 = arith.constant 0 : index
    %c0_116 = arith.constant 0 : index
    %125 = vector.load %arg2[%c1_113, %c5_114, %c0_115, %c0_116] : memref<4x8x16x128xf32, #tpu.memory_space<vmem>>, vector<1x1x16x128xf32>
    %126 = vector.shape_cast %125 : vector<1x1x16x128xf32> to vector<16x128xf32>
    %c2_117 = arith.constant 2 : index
    %c5_118 = arith.constant 5 : index
    %c0_119 = arith.constant 0 : index
    %c0_120 = arith.constant 0 : index
    %127 = vector.load %arg2[%c2_117, %c5_118, %c0_119, %c0_120] : memref<4x8x16x128xf32, #tpu.memory_space<vmem>>, vector<1x1x16x128xf32>
    %128 = vector.shape_cast %127 : vector<1x1x16x128xf32> to vector<16x128xf32>
    %c3_121 = arith.constant 3 : index
    %c5_122 = arith.constant 5 : index
    %c0_123 = arith.constant 0 : index
    %c0_124 = arith.constant 0 : index
    %129 = vector.load %arg2[%c3_121, %c5_122, %c0_123, %c0_124] : memref<4x8x16x128xf32, #tpu.memory_space<vmem>>, vector<1x1x16x128xf32>
    %130 = vector.shape_cast %129 : vector<1x1x16x128xf32> to vector<16x128xf32>
    %131 = arith.subf %5, %124 : vector<16x128xf32>
    %132 = arith.mulf %126, %131 : vector<16x128xf32>
    %133 = arith.addf %132, %128 : vector<16x128xf32>
    %134 = arith.mulf %133, %131 : vector<16x128xf32>
    %135 = arith.addf %134, %130 : vector<16x128xf32>
    %136 = arith.addf %132, %132 : vector<16x128xf32>
    %137 = arith.addf %136, %128 : vector<16x128xf32>
    %138 = arith.select %122, %135, %120 : vector<16x128xi1>, vector<16x128xf32>
    %139 = arith.select %122, %137, %121 : vector<16x128xi1>, vector<16x128xf32>
    %140 = arith.xori %26, %29 : vector<16x128xi1>
    %c0_125 = arith.constant 0 : index
    %c6_126 = arith.constant 6 : index
    %c0_127 = arith.constant 0 : index
    %c0_128 = arith.constant 0 : index
    %141 = vector.load %arg2[%c0_125, %c6_126, %c0_127, %c0_128] : memref<4x8x16x128xf32, #tpu.memory_space<vmem>>, vector<1x1x16x128xf32>
    %142 = vector.shape_cast %141 : vector<1x1x16x128xf32> to vector<16x128xf32>
    %c1_129 = arith.constant 1 : index
    %c6_130 = arith.constant 6 : index
    %c0_131 = arith.constant 0 : index
    %c0_132 = arith.constant 0 : index
    %143 = vector.load %arg2[%c1_129, %c6_130, %c0_131, %c0_132] : memref<4x8x16x128xf32, #tpu.memory_space<vmem>>, vector<1x1x16x128xf32>
    %144 = vector.shape_cast %143 : vector<1x1x16x128xf32> to vector<16x128xf32>
    %c2_133 = arith.constant 2 : index
    %c6_134 = arith.constant 6 : index
    %c0_135 = arith.constant 0 : index
    %c0_136 = arith.constant 0 : index
    %145 = vector.load %arg2[%c2_133, %c6_134, %c0_135, %c0_136] : memref<4x8x16x128xf32, #tpu.memory_space<vmem>>, vector<1x1x16x128xf32>
    %146 = vector.shape_cast %145 : vector<1x1x16x128xf32> to vector<16x128xf32>
    %c3_137 = arith.constant 3 : index
    %c6_138 = arith.constant 6 : index
    %c0_139 = arith.constant 0 : index
    %c0_140 = arith.constant 0 : index
    %147 = vector.load %arg2[%c3_137, %c6_138, %c0_139, %c0_140] : memref<4x8x16x128xf32, #tpu.memory_space<vmem>>, vector<1x1x16x128xf32>
    %148 = vector.shape_cast %147 : vector<1x1x16x128xf32> to vector<16x128xf32>
    %149 = arith.subf %5, %142 : vector<16x128xf32>
    %150 = arith.mulf %144, %149 : vector<16x128xf32>
    %151 = arith.addf %150, %146 : vector<16x128xf32>
    %152 = arith.mulf %151, %149 : vector<16x128xf32>
    %153 = arith.addf %152, %148 : vector<16x128xf32>
    %154 = arith.addf %150, %150 : vector<16x128xf32>
    %155 = arith.addf %154, %146 : vector<16x128xf32>
    %156 = arith.select %140, %153, %138 : vector<16x128xi1>, vector<16x128xf32>
    %157 = arith.select %140, %155, %139 : vector<16x128xi1>, vector<16x128xf32>
    %c0_141 = arith.constant 0 : index
    %c7_142 = arith.constant 7 : index
    %c0_143 = arith.constant 0 : index
    %c0_144 = arith.constant 0 : index
    %158 = vector.load %arg2[%c0_141, %c7_142, %c0_143, %c0_144] : memref<4x8x16x128xf32, #tpu.memory_space<vmem>>, vector<1x1x16x128xf32>
    %159 = vector.shape_cast %158 : vector<1x1x16x128xf32> to vector<16x128xf32>
    %c1_145 = arith.constant 1 : index
    %c7_146 = arith.constant 7 : index
    %c0_147 = arith.constant 0 : index
    %c0_148 = arith.constant 0 : index
    %160 = vector.load %arg2[%c1_145, %c7_146, %c0_147, %c0_148] : memref<4x8x16x128xf32, #tpu.memory_space<vmem>>, vector<1x1x16x128xf32>
    %161 = vector.shape_cast %160 : vector<1x1x16x128xf32> to vector<16x128xf32>
    %c2_149 = arith.constant 2 : index
    %c7_150 = arith.constant 7 : index
    %c0_151 = arith.constant 0 : index
    %c0_152 = arith.constant 0 : index
    %162 = vector.load %arg2[%c2_149, %c7_150, %c0_151, %c0_152] : memref<4x8x16x128xf32, #tpu.memory_space<vmem>>, vector<1x1x16x128xf32>
    %163 = vector.shape_cast %162 : vector<1x1x16x128xf32> to vector<16x128xf32>
    %c3_153 = arith.constant 3 : index
    %c7_154 = arith.constant 7 : index
    %c0_155 = arith.constant 0 : index
    %c0_156 = arith.constant 0 : index
    %164 = vector.load %arg2[%c3_153, %c7_154, %c0_155, %c0_156] : memref<4x8x16x128xf32, #tpu.memory_space<vmem>>, vector<1x1x16x128xf32>
    %165 = vector.shape_cast %164 : vector<1x1x16x128xf32> to vector<16x128xf32>
    %166 = arith.subf %5, %159 : vector<16x128xf32>
    %167 = arith.mulf %161, %166 : vector<16x128xf32>
    %168 = arith.addf %167, %163 : vector<16x128xf32>
    %169 = arith.mulf %168, %166 : vector<16x128xf32>
    %170 = arith.addf %169, %165 : vector<16x128xf32>
    %171 = arith.addf %167, %167 : vector<16x128xf32>
    %172 = arith.addf %171, %163 : vector<16x128xf32>
    %173 = arith.select %29, %170, %156 : vector<16x128xi1>, vector<16x128xf32>
    %174 = arith.select %29, %172, %157 : vector<16x128xi1>, vector<16x128xf32>
    %cst_157 = arith.constant 7.000000e-10 : f32
    %175 = vector.broadcast %cst_157 : f32 to vector<16x128xf32>
    %176 = arith.addf %174, %175 : vector<16x128xf32>
    %cst_158 = arith.constant 1.000000e-10 : f32
    %177 = vector.broadcast %cst_158 : f32 to vector<16x128xf32>
    %178 = arith.maximumf %176, %177 : vector<16x128xf32>
    %179 = tpu.transpose %173, [1, 0] : vector<16x128xf32> -> vector<128x16xf32>
    %c0_159 = arith.constant 0 : index
    %c0_160 = arith.constant 0 : index
    %180 = vector.load %arg3[%c0_159, %c0_160] : memref<256x16xf32, #tpu.memory_space<vmem>>, vector<128x16xf32>
    tpu.vector_store %arg3[%c0_159, %c0_160], %179 {strides = array<i32>} : memref<256x16xf32, #tpu.memory_space<vmem>>, vector<128x16xf32>,
    %181 = math.log %178 : vector<16x128xf32>
    %cst_161 = arith.constant dense<0.000000e+00> : vector<128xf32>
    %182 = vector.multi_reduction <add>, %181, %cst_161 [0] : vector<16x128xf32> to vector<128xf32>
    %183 = vector.shape_cast %182 : vector<128xf32> to vector<1x128xf32>
    %c0_162 = arith.constant 0 : index
    %c0_163 = arith.constant 0 : index
    %184 = vector.load %arg4[%c0_162, %c0_163] : memref<1x256xf32, #tpu.memory_space<vmem>>, vector<1x128xf32>
    tpu.vector_store %arg4[%c0_162, %c0_163], %183 {strides = array<i32>} : memref<1x256xf32, #tpu.memory_space<vmem>>, vector<1x128xf32>,
    %c128 = arith.constant 128 : index
    %c0_164 = arith.constant 0 : index
    %185 = vector.load %arg1[%c128, %c0_164] : memref<256x16xf32, #tpu.memory_space<vmem>>, vector<128x16xf32>
    %186 = tpu.transpose %185, [1, 0] : vector<128x16xf32> -> vector<16x128xf32>
    %cst_165 = arith.constant 1.000000e-10 : f32
    %cst_166 = arith.constant 1.000000e+00 : f32
    %187 = vector.broadcast %cst_165 : f32 to vector<16x128xf32>
    %188 = arith.maximumf %187, %186 : vector<16x128xf32>
    %189 = vector.broadcast %cst_166 : f32 to vector<16x128xf32>
    %190 = arith.minimumf %189, %188 : vector<16x128xf32>
    %c0_167 = arith.constant 0 : index
    %c0_168 = arith.constant 0 : index
    %c0_169 = arith.constant 0 : index
    %c0_170 = arith.constant 0 : index
    %191 = vector.load %arg2[%c0_167, %c0_168, %c0_169, %c0_170] : memref<4x8x16x128xf32, #tpu.memory_space<vmem>>, vector<1x1x16x128xf32>
    %192 = vector.shape_cast %191 : vector<1x1x16x128xf32> to vector<16x128xf32>
    %193 = arith.cmpf ogt, %190, %192 : vector<16x128xf32>
    %c0_171 = arith.constant 0 : index
    %c1_172 = arith.constant 1 : index
    %c0_173 = arith.constant 0 : index
    %c0_174 = arith.constant 0 : index
    %194 = vector.load %arg2[%c0_171, %c1_172, %c0_173, %c0_174] : memref<4x8x16x128xf32, #tpu.memory_space<vmem>>, vector<1x1x16x128xf32>
    %195 = vector.shape_cast %194 : vector<1x1x16x128xf32> to vector<16x128xf32>
    %196 = arith.cmpf ogt, %190, %195 : vector<16x128xf32>
    %c0_175 = arith.constant 0 : index
    %c2_176 = arith.constant 2 : index
    %c0_177 = arith.constant 0 : index
    %c0_178 = arith.constant 0 : index
    %197 = vector.load %arg2[%c0_175, %c2_176, %c0_177, %c0_178] : memref<4x8x16x128xf32, #tpu.memory_space<vmem>>, vector<1x1x16x128xf32>
    %198 = vector.shape_cast %197 : vector<1x1x16x128xf32> to vector<16x128xf32>
    %199 = arith.cmpf ogt, %190, %198 : vector<16x128xf32>
    %c0_179 = arith.constant 0 : index
    %c3_180 = arith.constant 3 : index
    %c0_181 = arith.constant 0 : index
    %c0_182 = arith.constant 0 : index
    %200 = vector.load %arg2[%c0_179, %c3_180, %c0_181, %c0_182] : memref<4x8x16x128xf32, #tpu.memory_space<vmem>>, vector<1x1x16x128xf32>
    %201 = vector.shape_cast %200 : vector<1x1x16x128xf32> to vector<16x128xf32>
    %202 = arith.cmpf ogt, %190, %201 : vector<16x128xf32>
    %c0_183 = arith.constant 0 : index
    %c4_184 = arith.constant 4 : index
    %c0_185 = arith.constant 0 : index
    %c0_186 = arith.constant 0 : index
    %203 = vector.load %arg2[%c0_183, %c4_184, %c0_185, %c0_186] : memref<4x8x16x128xf32, #tpu.memory_space<vmem>>, vector<1x1x16x128xf32>
    %204 = vector.shape_cast %203 : vector<1x1x16x128xf32> to vector<16x128xf32>
    %205 = arith.cmpf ogt, %190, %204 : vector<16x128xf32>
    %c0_187 = arith.constant 0 : index
    %c5_188 = arith.constant 5 : index
    %c0_189 = arith.constant 0 : index
    %c0_190 = arith.constant 0 : index
    %206 = vector.load %arg2[%c0_187, %c5_188, %c0_189, %c0_190] : memref<4x8x16x128xf32, #tpu.memory_space<vmem>>, vector<1x1x16x128xf32>
    %207 = vector.shape_cast %206 : vector<1x1x16x128xf32> to vector<16x128xf32>
    %208 = arith.cmpf ogt, %190, %207 : vector<16x128xf32>
    %c0_191 = arith.constant 0 : index
    %c6_192 = arith.constant 6 : index
    %c0_193 = arith.constant 0 : index
    %c0_194 = arith.constant 0 : index
    %209 = vector.load %arg2[%c0_191, %c6_192, %c0_193, %c0_194] : memref<4x8x16x128xf32, #tpu.memory_space<vmem>>, vector<1x1x16x128xf32>
    %210 = vector.shape_cast %209 : vector<1x1x16x128xf32> to vector<16x128xf32>
    %211 = arith.cmpf ogt, %190, %210 : vector<16x128xf32>
    %c0_195 = arith.constant 0 : index
    %c7_196 = arith.constant 7 : index
    %c0_197 = arith.constant 0 : index
    %c0_198 = arith.constant 0 : index
    %212 = vector.load %arg2[%c0_195, %c7_196, %c0_197, %c0_198] : memref<4x8x16x128xf32, #tpu.memory_space<vmem>>, vector<1x1x16x128xf32>
    %213 = vector.shape_cast %212 : vector<1x1x16x128xf32> to vector<16x128xf32>
    %214 = arith.cmpf ogt, %190, %213 : vector<16x128xf32>
    %cst_199 = arith.constant 0.000000e+00 : f32
    %215 = vector.broadcast %cst_199 : f32 to vector<16x128xf32>
    %cst_200 = arith.constant 0.000000e+00 : f32
    %216 = vector.broadcast %cst_200 : f32 to vector<16x128xf32>
    %217 = arith.xori %193, %196 : vector<16x128xi1>
    %c0_201 = arith.constant 0 : index
    %c0_202 = arith.constant 0 : index
    %c0_203 = arith.constant 0 : index
    %c0_204 = arith.constant 0 : index
    %218 = vector.load %arg2[%c0_201, %c0_202, %c0_203, %c0_204] : memref<4x8x16x128xf32, #tpu.memory_space<vmem>>, vector<1x1x16x128xf32>
    %219 = vector.shape_cast %218 : vector<1x1x16x128xf32> to vector<16x128xf32>
    %c1_205 = arith.constant 1 : index
    %c0_206 = arith.constant 0 : index
    %c0_207 = arith.constant 0 : index
    %c0_208 = arith.constant 0 : index
    %220 = vector.load %arg2[%c1_205, %c0_206, %c0_207, %c0_208] : memref<4x8x16x128xf32, #tpu.memory_space<vmem>>, vector<1x1x16x128xf32>
    %221 = vector.shape_cast %220 : vector<1x1x16x128xf32> to vector<16x128xf32>
    %c2_209 = arith.constant 2 : index
    %c0_210 = arith.constant 0 : index
    %c0_211 = arith.constant 0 : index
    %c0_212 = arith.constant 0 : index
    %222 = vector.load %arg2[%c2_209, %c0_210, %c0_211, %c0_212] : memref<4x8x16x128xf32, #tpu.memory_space<vmem>>, vector<1x1x16x128xf32>
    %223 = vector.shape_cast %222 : vector<1x1x16x128xf32> to vector<16x128xf32>
    %c3_213 = arith.constant 3 : index
    %c0_214 = arith.constant 0 : index
    %c0_215 = arith.constant 0 : index
    %c0_216 = arith.constant 0 : index
    %224 = vector.load %arg2[%c3_213, %c0_214, %c0_215, %c0_216] : memref<4x8x16x128xf32, #tpu.memory_space<vmem>>, vector<1x1x16x128xf32>
    %225 = vector.shape_cast %224 : vector<1x1x16x128xf32> to vector<16x128xf32>
    %226 = arith.subf %190, %219 : vector<16x128xf32>
    %227 = arith.mulf %221, %226 : vector<16x128xf32>
    %228 = arith.addf %227, %223 : vector<16x128xf32>
    %229 = arith.mulf %228, %226 : vector<16x128xf32>
    %230 = arith.addf %229, %225 : vector<16x128xf32>
    %231 = arith.addf %227, %227 : vector<16x128xf32>
    %232 = arith.addf %231, %223 : vector<16x128xf32>
    %233 = arith.select %217, %230, %215 : vector<16x128xi1>, vector<16x128xf32>
    %234 = arith.select %217, %232, %216 : vector<16x128xi1>, vector<16x128xf32>
    %235 = arith.xori %196, %199 : vector<16x128xi1>
    %c0_217 = arith.constant 0 : index
    %c1_218 = arith.constant 1 : index
    %c0_219 = arith.constant 0 : index
    %c0_220 = arith.constant 0 : index
    %236 = vector.load %arg2[%c0_217, %c1_218, %c0_219, %c0_220] : memref<4x8x16x128xf32, #tpu.memory_space<vmem>>, vector<1x1x16x128xf32>
    %237 = vector.shape_cast %236 : vector<1x1x16x128xf32> to vector<16x128xf32>
    %c1_221 = arith.constant 1 : index
    %c1_222 = arith.constant 1 : index
    %c0_223 = arith.constant 0 : index
    %c0_224 = arith.constant 0 : index
    %238 = vector.load %arg2[%c1_221, %c1_222, %c0_223, %c0_224] : memref<4x8x16x128xf32, #tpu.memory_space<vmem>>, vector<1x1x16x128xf32>
    %239 = vector.shape_cast %238 : vector<1x1x16x128xf32> to vector<16x128xf32>
    %c2_225 = arith.constant 2 : index
    %c1_226 = arith.constant 1 : index
    %c0_227 = arith.constant 0 : index
    %c0_228 = arith.constant 0 : index
    %240 = vector.load %arg2[%c2_225, %c1_226, %c0_227, %c0_228] : memref<4x8x16x128xf32, #tpu.memory_space<vmem>>, vector<1x1x16x128xf32>
    %241 = vector.shape_cast %240 : vector<1x1x16x128xf32> to vector<16x128xf32>
    %c3_229 = arith.constant 3 : index
    %c1_230 = arith.constant 1 : index
    %c0_231 = arith.constant 0 : index
    %c0_232 = arith.constant 0 : index
    %242 = vector.load %arg2[%c3_229, %c1_230, %c0_231, %c0_232] : memref<4x8x16x128xf32, #tpu.memory_space<vmem>>, vector<1x1x16x128xf32>
    %243 = vector.shape_cast %242 : vector<1x1x16x128xf32> to vector<16x128xf32>
    %244 = arith.subf %190, %237 : vector<16x128xf32>
    %245 = arith.mulf %239, %244 : vector<16x128xf32>
    %246 = arith.addf %245, %241 : vector<16x128xf32>
    %247 = arith.mulf %246, %244 : vector<16x128xf32>
    %248 = arith.addf %247, %243 : vector<16x128xf32>
    %249 = arith.addf %245, %245 : vector<16x128xf32>
    %250 = arith.addf %249, %241 : vector<16x128xf32>
    %251 = arith.select %235, %248, %233 : vector<16x128xi1>, vector<16x128xf32>
    %252 = arith.select %235, %250, %234 : vector<16x128xi1>, vector<16x128xf32>
    %253 = arith.xori %199, %202 : vector<16x128xi1>
    %c0_233 = arith.constant 0 : index
    %c2_234 = arith.constant 2 : index
    %c0_235 = arith.constant 0 : index
    %c0_236 = arith.constant 0 : index
    %254 = vector.load %arg2[%c0_233, %c2_234, %c0_235, %c0_236] : memref<4x8x16x128xf32, #tpu.memory_space<vmem>>, vector<1x1x16x128xf32>
    %255 = vector.shape_cast %254 : vector<1x1x16x128xf32> to vector<16x128xf32>
    %c1_237 = arith.constant 1 : index
    %c2_238 = arith.constant 2 : index
    %c0_239 = arith.constant 0 : index
    %c0_240 = arith.constant 0 : index
    %256 = vector.load %arg2[%c1_237, %c2_238, %c0_239, %c0_240] : memref<4x8x16x128xf32, #tpu.memory_space<vmem>>, vector<1x1x16x128xf32>
    %257 = vector.shape_cast %256 : vector<1x1x16x128xf32> to vector<16x128xf32>
    %c2_241 = arith.constant 2 : index
    %c2_242 = arith.constant 2 : index
    %c0_243 = arith.constant 0 : index
    %c0_244 = arith.constant 0 : index
    %258 = vector.load %arg2[%c2_241, %c2_242, %c0_243, %c0_244] : memref<4x8x16x128xf32, #tpu.memory_space<vmem>>, vector<1x1x16x128xf32>
    %259 = vector.shape_cast %258 : vector<1x1x16x128xf32> to vector<16x128xf32>
    %c3_245 = arith.constant 3 : index
    %c2_246 = arith.constant 2 : index
    %c0_247 = arith.constant 0 : index
    %c0_248 = arith.constant 0 : index
    %260 = vector.load %arg2[%c3_245, %c2_246, %c0_247, %c0_248] : memref<4x8x16x128xf32, #tpu.memory_space<vmem>>, vector<1x1x16x128xf32>
    %261 = vector.shape_cast %260 : vector<1x1x16x128xf32> to vector<16x128xf32>
    %262 = arith.subf %190, %255 : vector<16x128xf32>
    %263 = arith.mulf %257, %262 : vector<16x128xf32>
    %264 = arith.addf %263, %259 : vector<16x128xf32>
    %265 = arith.mulf %264, %262 : vector<16x128xf32>
    %266 = arith.addf %265, %261 : vector<16x128xf32>
    %267 = arith.addf %263, %263 : vector<16x128xf32>
    %268 = arith.addf %267, %259 : vector<16x128xf32>
    %269 = arith.select %253, %266, %251 : vector<16x128xi1>, vector<16x128xf32>
    %270 = arith.select %253, %268, %252 : vector<16x128xi1>, vector<16x128xf32>
    %271 = arith.xori %202, %205 : vector<16x128xi1>
    %c0_249 = arith.constant 0 : index
    %c3_250 = arith.constant 3 : index
    %c0_251 = arith.constant 0 : index
    %c0_252 = arith.constant 0 : index
    %272 = vector.load %arg2[%c0_249, %c3_250, %c0_251, %c0_252] : memref<4x8x16x128xf32, #tpu.memory_space<vmem>>, vector<1x1x16x128xf32>
    %273 = vector.shape_cast %272 : vector<1x1x16x128xf32> to vector<16x128xf32>
    %c1_253 = arith.constant 1 : index
    %c3_254 = arith.constant 3 : index
    %c0_255 = arith.constant 0 : index
    %c0_256 = arith.constant 0 : index
    %274 = vector.load %arg2[%c1_253, %c3_254, %c0_255, %c0_256] : memref<4x8x16x128xf32, #tpu.memory_space<vmem>>, vector<1x1x16x128xf32>
    %275 = vector.shape_cast %274 : vector<1x1x16x128xf32> to vector<16x128xf32>
    %c2_257 = arith.constant 2 : index
    %c3_258 = arith.constant 3 : index
    %c0_259 = arith.constant 0 : index
    %c0_260 = arith.constant 0 : index
    %276 = vector.load %arg2[%c2_257, %c3_258, %c0_259, %c0_260] : memref<4x8x16x128xf32, #tpu.memory_space<vmem>>, vector<1x1x16x128xf32>
    %277 = vector.shape_cast %276 : vector<1x1x16x128xf32> to vector<16x128xf32>
    %c3_261 = arith.constant 3 : index
    %c3_262 = arith.constant 3 : index
    %c0_263 = arith.constant 0 : index
    %c0_264 = arith.constant 0 : index
    %278 = vector.load %arg2[%c3_261, %c3_262, %c0_263, %c0_264] : memref<4x8x16x128xf32, #tpu.memory_space<vmem>>, vector<1x1x16x128xf32>
    %279 = vector.shape_cast %278 : vector<1x1x16x128xf32> to vector<16x128xf32>
    %280 = arith.subf %190, %273 : vector<16x128xf32>
    %281 = arith.mulf %275, %280 : vector<16x128xf32>
    %282 = arith.addf %281, %277 : vector<16x128xf32>
    %283 = arith.mulf %282, %280 : vector<16x128xf32>
    %284 = arith.addf %283, %279 : vector<16x128xf32>
    %285 = arith.addf %281, %281 : vector<16x128xf32>
    %286 = arith.addf %285, %277 : vector<16x128xf32>
    %287 = arith.select %271, %284, %269 : vector<16x128xi1>, vector<16x128xf32>
    %288 = arith.select %271, %286, %270 : vector<16x128xi1>, vector<16x128xf32>
    %289 = arith.xori %205, %208 : vector<16x128xi1>
    %c0_265 = arith.constant 0 : index
    %c4_266 = arith.constant 4 : index
    %c0_267 = arith.constant 0 : index
    %c0_268 = arith.constant 0 : index
    %290 = vector.load %arg2[%c0_265, %c4_266, %c0_267, %c0_268] : memref<4x8x16x128xf32, #tpu.memory_space<vmem>>, vector<1x1x16x128xf32>
    %291 = vector.shape_cast %290 : vector<1x1x16x128xf32> to vector<16x128xf32>
    %c1_269 = arith.constant 1 : index
    %c4_270 = arith.constant 4 : index
    %c0_271 = arith.constant 0 : index
    %c0_272 = arith.constant 0 : index
    %292 = vector.load %arg2[%c1_269, %c4_270, %c0_271, %c0_272] : memref<4x8x16x128xf32, #tpu.memory_space<vmem>>, vector<1x1x16x128xf32>
    %293 = vector.shape_cast %292 : vector<1x1x16x128xf32> to vector<16x128xf32>
    %c2_273 = arith.constant 2 : index
    %c4_274 = arith.constant 4 : index
    %c0_275 = arith.constant 0 : index
    %c0_276 = arith.constant 0 : index
    %294 = vector.load %arg2[%c2_273, %c4_274, %c0_275, %c0_276] : memref<4x8x16x128xf32, #tpu.memory_space<vmem>>, vector<1x1x16x128xf32>
    %295 = vector.shape_cast %294 : vector<1x1x16x128xf32> to vector<16x128xf32>
    %c3_277 = arith.constant 3 : index
    %c4_278 = arith.constant 4 : index
    %c0_279 = arith.constant 0 : index
    %c0_280 = arith.constant 0 : index
    %296 = vector.load %arg2[%c3_277, %c4_278, %c0_279, %c0_280] : memref<4x8x16x128xf32, #tpu.memory_space<vmem>>, vector<1x1x16x128xf32>
    %297 = vector.shape_cast %296 : vector<1x1x16x128xf32> to vector<16x128xf32>
    %298 = arith.subf %190, %291 : vector<16x128xf32>
    %299 = arith.mulf %293, %298 : vector<16x128xf32>
    %300 = arith.addf %299, %295 : vector<16x128xf32>
    %301 = arith.mulf %300, %298 : vector<16x128xf32>
    %302 = arith.addf %301, %297 : vector<16x128xf32>
    %303 = arith.addf %299, %299 : vector<16x128xf32>
    %304 = arith.addf %303, %295 : vector<16x128xf32>
    %305 = arith.select %289, %302, %287 : vector<16x128xi1>, vector<16x128xf32>
    %306 = arith.select %289, %304, %288 : vector<16x128xi1>, vector<16x128xf32>
    %307 = arith.xori %208, %211 : vector<16x128xi1>
    %c0_281 = arith.constant 0 : index
    %c5_282 = arith.constant 5 : index
    %c0_283 = arith.constant 0 : index
    %c0_284 = arith.constant 0 : index
    %308 = vector.load %arg2[%c0_281, %c5_282, %c0_283, %c0_284] : memref<4x8x16x128xf32, #tpu.memory_space<vmem>>, vector<1x1x16x128xf32>
    %309 = vector.shape_cast %308 : vector<1x1x16x128xf32> to vector<16x128xf32>
    %c1_285 = arith.constant 1 : index
    %c5_286 = arith.constant 5 : index
    %c0_287 = arith.constant 0 : index
    %c0_288 = arith.constant 0 : index
    %310 = vector.load %arg2[%c1_285, %c5_286, %c0_287, %c0_288] : memref<4x8x16x128xf32, #tpu.memory_space<vmem>>, vector<1x1x16x128xf32>
    %311 = vector.shape_cast %310 : vector<1x1x16x128xf32> to vector<16x128xf32>
    %c2_289 = arith.constant 2 : index
    %c5_290 = arith.constant 5 : index
    %c0_291 = arith.constant 0 : index
    %c0_292 = arith.constant 0 : index
    %312 = vector.load %arg2[%c2_289, %c5_290, %c0_291, %c0_292] : memref<4x8x16x128xf32, #tpu.memory_space<vmem>>, vector<1x1x16x128xf32>
    %313 = vector.shape_cast %312 : vector<1x1x16x128xf32> to vector<16x128xf32>
    %c3_293 = arith.constant 3 : index
    %c5_294 = arith.constant 5 : index
    %c0_295 = arith.constant 0 : index
    %c0_296 = arith.constant 0 : index
    %314 = vector.load %arg2[%c3_293, %c5_294, %c0_295, %c0_296] : memref<4x8x16x128xf32, #tpu.memory_space<vmem>>, vector<1x1x16x128xf32>
    %315 = vector.shape_cast %314 : vector<1x1x16x128xf32> to vector<16x128xf32>
    %316 = arith.subf %190, %309 : vector<16x128xf32>
    %317 = arith.mulf %311, %316 : vector<16x128xf32>
    %318 = arith.addf %317, %313 : vector<16x128xf32>
    %319 = arith.mulf %318, %316 : vector<16x128xf32>
    %320 = arith.addf %319, %315 : vector<16x128xf32>
    %321 = arith.addf %317, %317 : vector<16x128xf32>
    %322 = arith.addf %321, %313 : vector<16x128xf32>
    %323 = arith.select %307, %320, %305 : vector<16x128xi1>, vector<16x128xf32>
    %324 = arith.select %307, %322, %306 : vector<16x128xi1>, vector<16x128xf32>
    %325 = arith.xori %211, %214 : vector<16x128xi1>
    %c0_297 = arith.constant 0 : index
    %c6_298 = arith.constant 6 : index
    %c0_299 = arith.constant 0 : index
    %c0_300 = arith.constant 0 : index
    %326 = vector.load %arg2[%c0_297, %c6_298, %c0_299, %c0_300] : memref<4x8x16x128xf32, #tpu.memory_space<vmem>>, vector<1x1x16x128xf32>
    %327 = vector.shape_cast %326 : vector<1x1x16x128xf32> to vector<16x128xf32>
    %c1_301 = arith.constant 1 : index
    %c6_302 = arith.constant 6 : index
    %c0_303 = arith.constant 0 : index
    %c0_304 = arith.constant 0 : index
    %328 = vector.load %arg2[%c1_301, %c6_302, %c0_303, %c0_304] : memref<4x8x16x128xf32, #tpu.memory_space<vmem>>, vector<1x1x16x128xf32>
    %329 = vector.shape_cast %328 : vector<1x1x16x128xf32> to vector<16x128xf32>
    %c2_305 = arith.constant 2 : index
    %c6_306 = arith.constant 6 : index
    %c0_307 = arith.constant 0 : index
    %c0_308 = arith.constant 0 : index
    %330 = vector.load %arg2[%c2_305, %c6_306, %c0_307, %c0_308] : memref<4x8x16x128xf32, #tpu.memory_space<vmem>>, vector<1x1x16x128xf32>
    %331 = vector.shape_cast %330 : vector<1x1x16x128xf32> to vector<16x128xf32>
    %c3_309 = arith.constant 3 : index
    %c6_310 = arith.constant 6 : index
    %c0_311 = arith.constant 0 : index
    %c0_312 = arith.constant 0 : index
    %332 = vector.load %arg2[%c3_309, %c6_310, %c0_311, %c0_312] : memref<4x8x16x128xf32, #tpu.memory_space<vmem>>, vector<1x1x16x128xf32>
    %333 = vector.shape_cast %332 : vector<1x1x16x128xf32> to vector<16x128xf32>
    %334 = arith.subf %190, %327 : vector<16x128xf32>
    %335 = arith.mulf %329, %334 : vector<16x128xf32>
    %336 = arith.addf %335, %331 : vector<16x128xf32>
    %337 = arith.mulf %336, %334 : vector<16x128xf32>
    %338 = arith.addf %337, %333 : vector<16x128xf32>
    %339 = arith.addf %335, %335 : vector<16x128xf32>
    %340 = arith.addf %339, %331 : vector<16x128xf32>
    %341 = arith.select %325, %338, %323 : vector<16x128xi1>, vector<16x128xf32>
    %342 = arith.select %325, %340, %324 : vector<16x128xi1>, vector<16x128xf32>
    %c0_313 = arith.constant 0 : index
    %c7_314 = arith.constant 7 : index
    %c0_315 = arith.constant 0 : index
    %c0_316 = arith.constant 0 : index
    %343 = vector.load %arg2[%c0_313, %c7_314, %c0_315, %c0_316] : memref<4x8x16x128xf32, #tpu.memory_space<vmem>>, vector<1x1x16x128xf32>
    %344 = vector.shape_cast %343 : vector<1x1x16x128xf32> to vector<16x128xf32>
    %c1_317 = arith.constant 1 : index
    %c7_318 = arith.constant 7 : index
    %c0_319 = arith.constant 0 : index
    %c0_320 = arith.constant 0 : index
    %345 = vector.load %arg2[%c1_317, %c7_318, %c0_319, %c0_320] : memref<4x8x16x128xf32, #tpu.memory_space<vmem>>, vector<1x1x16x128xf32>
    %346 = vector.shape_cast %345 : vector<1x1x16x128xf32> to vector<16x128xf32>
    %c2_321 = arith.constant 2 : index
    %c7_322 = arith.constant 7 : index
    %c0_323 = arith.constant 0 : index
    %c0_324 = arith.constant 0 : index
    %347 = vector.load %arg2[%c2_321, %c7_322, %c0_323, %c0_324] : memref<4x8x16x128xf32, #tpu.memory_space<vmem>>, vector<1x1x16x128xf32>
    %348 = vector.shape_cast %347 : vector<1x1x16x128xf32> to vector<16x128xf32>
    %c3_325 = arith.constant 3 : index
    %c7_326 = arith.constant 7 : index
    %c0_327 = arith.constant 0 : index
    %c0_328 = arith.constant 0 : index
    %349 = vector.load %arg2[%c3_325, %c7_326, %c0_327, %c0_328] : memref<4x8x16x128xf32, #tpu.memory_space<vmem>>, vector<1x1x16x128xf32>
    %350 = vector.shape_cast %349 : vector<1x1x16x128xf32> to vector<16x128xf32>
    %351 = arith.subf %190, %344 : vector<16x128xf32>
    %352 = arith.mulf %346, %351 : vector<16x128xf32>
    %353 = arith.addf %352, %348 : vector<16x128xf32>
    %354 = arith.mulf %353, %351 : vector<16x128xf32>
    %355 = arith.addf %354, %350 : vector<16x128xf32>
    %356 = arith.addf %352, %352 : vector<16x128xf32>
    %357 = arith.addf %356, %348 : vector<16x128xf32>
    %358 = arith.select %214, %355, %341 : vector<16x128xi1>, vector<16x128xf32>
    %359 = arith.select %214, %357, %342 : vector<16x128xi1>, vector<16x128xf32>
    %cst_329 = arith.constant 7.000000e-10 : f32
    %360 = vector.broadcast %cst_329 : f32 to vector<16x128xf32>
    %361 = arith.addf %359, %360 : vector<16x128xf32>
    %cst_330 = arith.constant 1.000000e-10 : f32
    %362 = vector.broadcast %cst_330 : f32 to vector<16x128xf32>
    %363 = arith.maximumf %361, %362 : vector<16x128xf32>
    %364 = tpu.transpose %358, [1, 0] : vector<16x128xf32> -> vector<128x16xf32>
    %c128_331 = arith.constant 128 : index
    %c0_332 = arith.constant 0 : index
    %365 = vector.load %arg3[%c128_331, %c0_332] : memref<256x16xf32, #tpu.memory_space<vmem>>, vector<128x16xf32>
    tpu.vector_store %arg3[%c128_331, %c0_332], %364 {strides = array<i32>} : memref<256x16xf32, #tpu.memory_space<vmem>>, vector<128x16xf32>,
    %366 = math.log %363 : vector<16x128xf32>
    %cst_333 = arith.constant dense<0.000000e+00> : vector<128xf32>
    %367 = vector.multi_reduction <add>, %366, %cst_333 [0] : vector<16x128xf32> to vector<128xf32>
    %368 = vector.shape_cast %367 : vector<128xf32> to vector<1x128xf32>
    %c0_334 = arith.constant 0 : index
    %c128_335 = arith.constant 128 : index
    %369 = vector.load %arg4[%c0_334, %c128_335] : memref<1x256xf32, #tpu.memory_space<vmem>>, vector<1x128xf32>
    tpu.vector_store %arg4[%c0_334, %c128_335], %368 {strides = array<i32>} : memref<1x256xf32, #tpu.memory_space<vmem>>, vector<1x128xf32>,
    return
  }
  func.func @transform_0(%arg0: i32) -> (i32, i32) {
    %c0_i32 = arith.constant 0 : i32
    %c0_i32_0 = arith.constant 0 : i32
    return %arg0, %c0_i32 : i32, i32
  }
  func.func @transform_1(%arg0: i32) -> (i32, i32, i32, i32) {
    %c0_i32 = arith.constant 0 : i32
    %c0_i32_0 = arith.constant 0 : i32
    %c0_i32_1 = arith.constant 0 : i32
    %c0_i32_2 = arith.constant 0 : i32
    %c0_i32_3 = arith.constant 0 : i32
    return %c0_i32, %c0_i32_0, %c0_i32_1, %c0_i32_2 : i32, i32, i32, i32
  }
  func.func @transform_2(%arg0: i32) -> (i32, i32) {
    %c0_i32 = arith.constant 0 : i32
    %c0_i32_0 = arith.constant 0 : i32
    return %arg0, %c0_i32 : i32, i32
  }
  func.func @transform_3(%arg0: i32) -> (i32, i32) {
    %c0_i32 = arith.constant 0 : i32
    %c0_i32_0 = arith.constant 0 : i32
    return %c0_i32, %arg0 : i32, i32
  }
}

</mosaic_0001>

<bundles_post_ra>
// kernel: tpu_custom_call.1
= control target key start
LH: loop header
LB: loop body
LE: loop exit
PB: predicated region body
PF: predicated region fallthrough
CT: control target
= control target key end

     0   :  { %9 = vsyncpa [#allocation3], 0  ;;  %s2447_s0 = inlined_call_operand.vmem [shape: f32[512,16], index: 0, kind: input, shape index: {}]   ;;  %s2448_s1 = inlined_call_operand.vmem [shape: f32[4,8,16,128], index: 1, kind: input, shape index: {}]   ;;  %s2449_s2 = inlined_call_operand.vmem [shape: f32[512,16], index: 2, kind: output, shape index: {0}]   ;;  %s2450_s3 = inlined_call_operand.hbm [shape: f32[1,512], index: 3, kind: output, shape index: {1}]  }
   0x1   :  { %11 = vsyncpa [#allocation3 + $0x1], 0  ;;  %s1310_s12 = smov 0   ;;  %s1312_s13 = smov 0  }
   0x2   :  { %s1314_s14 = smov 0   ;;  %s1316_s15 = smov 0  }
   0x3 LB: > { %s1037_s16 = sadd.s32 4294967295, %s1287_s15   ;;  %s1038_s17 = sadd.s32 4294967294, %s1287_s15   ;;  %s1287_s15 = sphi %s1316_s15, %s2486_s15   ;;  %s1283_s14 = sphi %s1314_s14, %s2485_s14   ;;  %s1279_s13 = sphi %s1312_s13, %s2484_s13   ;;  %s1275_s12 = sphi %s1310_s12, %s2483_s12  }
   0x4   : > { %s1333_s18 = sadd.s32 1, %s1287_s15   ;;  %s97_s19 = sadd.s32 1, %s1283_s14 }
   0x5   : > { %s94_s20 = ssub.s32 %s1287_s15, %s1333_s18  ;;  %p107_p0 = scmp.ne.s32.totalorder %s1283_s14, %s1279_s13 }
   0x6   : > { %p95_p1 = scmp.eq.s32.totalorder %s94_s20, 0  ;;  %p108_p2 = scmp.eq.s32.totalorder %s1037_s16, 1 }
   0x7   : > { %p113_p3 = scmp.ne.s32.totalorder %s1279_s13, %s1275_s12  ;;  %p114_p4 = scmp.eq.s32.totalorder %s1038_s17, 1 }
   0x8   : > { %s1343_s21 = scalar_select %p95_p1, %s1283_s14, %s97_s19  }
   0x9   : > { %p1345_p5 = por %p108_p2, %p107_p0  ;;  %p1349_p6 = por %p114_p4, %p113_p3 }
   0xa   : > { %p1041_p7 = scmp.ge.s32.totalorder %s1287_s15, 1  ;;  %p144_p8 = scmp.lt.s32.totalorder %s1287_s15, 3 }
   0xc   : > { %p145_p9 = pnand %p1041_p7, %p144_p8 }
   0xd   : > { %s1355_s24 = sshll.u32 (!%p145_p9), %s1037_s16, 5  ;;  %v1406_v37 = vld [vmem:[%s2448_s1] sm:$0xff] (!%p145_p9)  ;;  %v1411_v38 = vld [vmem:[%s2448_s1 + $0x10] sm:$0xff] (!%p145_p9)  ;;  %s170_s30 = sand.u32 (!%p145_p9), 1, %s1279_s13  }
   0xe   : > { %148 = sbr.rel (%p145_p9) target bundleno = 431 (0x1af), region = 28  ;;  %p174_p10 = scmp.lt.s32.totalorder (!%p145_p9), %s1355_s24, 63  ;;  %v1416_v39 = vld [vmem:[%s2448_s1 + $0x20] sm:$0xff] (!%p145_p9)  ;;  %v1421_v40 = vld [vmem:[%s2448_s1 + $0x30] sm:$0xff] (!%p145_p9) }
   0xf   : > { %v1426_v41 = vld [vmem:[%s2448_s1 + $0x40] sm:$0xff] (!%p145_p9)  ;;  %v1431_v42 = vld [vmem:[%s2448_s1 + $0x50] sm:$0xff] (!%p145_p9)  ;;  %s1042_s4 = sshll.u32 (!%p145_p9), %s170_s30, 1  ;;  %s2340_s8 = scalar_lea.hbm (!%p145_p9), %s2450_s3, %s1355_s24 }
  0x10   : > { %v1436_v43 = vld [vmem:[%s2448_s1 + $0x60] sm:$0xff] (!%p145_p9)  ;;  %v1445_v45 = vld [vmem:[%s2448_s1 + $0x70] sm:$0xff] (!%p145_p9)  ;;  %s172_s5 = scalar_lea.vmem (!%p145_p9), [#allocation2], %s1042_s4  ;;  %s936_s10 = scalar_lea.sflag (!%p145_p9), [#allocation3], %s170_s30 }
  0x11   : > { %v1450_v46 = vld [vmem:[%s2448_s1 + $0x80] sm:$0xff] (!%p145_p9)  ;;  %v1455_v47 = vld [vmem:[%s2448_s1 + $0x90] sm:$0xff] (!%p145_p9)  ;;  %s954_s9 = sshll.u32 (!%p145_p9), %s172_s5, 4  ;;  %s1289_s16 = smov (!%p145_p9), [#allocation2]   ;;  %s955_s9 = int_to_ptr.vmem [resolvable:$true] %s954_s9 }
  0x12   : > { %v1468_v48 = vld [vmem:[%s2448_s1 + $0xa0] sm:$0xff] (!%p145_p9)  ;;  %v1473_v49 = vld [vmem:[%s2448_s1 + $0xb0] sm:$0xff] (!%p145_p9)  ;;  %s1225_s11 = scalar_lea.vmem (!%p145_p9), %s955_s9, 32  ;;  %s1229_s17 = sshll.u32 (!%p145_p9), %s1289_s16, 4  ;;  %s1230_s17 = int_to_ptr.vmem [resolvable:$false] %s1229_s17 }
  0x13   : > { %v1478_v50 = vld [vmem:[%s2448_s1 + $0xc0] sm:$0xff] (!%p145_p9)  ;;  %v1491_v55 = vld [vmem:[%s2448_s1 + $0xd0] sm:$0xff] (!%p145_p9)  ;;  %p1226_p11 = scmp.ne.s32.totalorder (!%p145_p9), %s955_s9, %s1225_s11  ;;  %s1231_s19 = scalar_lea.vmem (!%p145_p9), %s1230_s17, 64 }
  0x14   : > { %v1496_v56 = vld [vmem:[%s2448_s1 + $0xe0] sm:$0xff] (!%p145_p9)  ;;  %v1501_v57 = vld [vmem:[%s2448_s1 + $0xf0] sm:$0xff] (!%p145_p9)  ;;  %p1232_p0 = scmp.lt.s32.totalorder (!%p145_p9), %s955_s9, %s1230_s17  ;;  %p1233_p1 = scmp.lt.s32.totalorder (!%p145_p9), %s1231_s19, %s1225_s11 }
  0x15   : > { %s1359_s25 = scalar_select %p174_p10, %s1355_s24, 63  ;;  %v1508_v58 = vld [vmem:[%s2448_s1 + $0x100] sm:$0xff]  ;;  %v1513_v59 = vld [vmem:[%s2448_s1 + $0x110] sm:$0xff] }
  0x16   : > { %p1227_p12 = pnand %p1226_p11, %p1345_p5  ;;  %p1234_p2 = por %p1233_p1, %p1232_p0 }
  0x17   : > { %s1044_s26 = sshll.u32 %s1359_s25, 3 }
  0x18   : > { %s1367_s29 = scalar_lea.vmem %s2447_s0, %s1044_s26  ;;  %p1228_p13 = pneg %p1227_p12 }
  0x19   : > { %v576_v0 = vld [vmem:[%s1367_s29 + $0x80] sm:$0xff]  ;;  %v577_v2 = vld [vmem:[%s1367_s29 + $0x88] sm:$0xff]  ;;  %v578_v4 = vld [vmem:[%s1367_s29 + $0x90] sm:$0xff] }
  0x1a   : > { %v186_v1 = vld [vmem:[%s1367_s29] sm:$0xff]  ;;  %592 = vxpose.xlu1.b32.start [1/16] (narrow) %v576_v0, 16  ;;  %v187_v3 = vld [vmem:[%s1367_s29 + $0x8] sm:$0xff]  ;;  %v188_v5 = vld [vmem:[%s1367_s29 + $0x10] sm:$0xff]  ;;  %p1235_p3 = pnand %p1234_p2, %p1228_p13 }
  0x1b   : > { %202 = vxpose.xlu0.b32.start [1/16] (narrow) %v186_v1, 16  ;;  %v579_v6 = vld [vmem:[%s1367_s29 + $0x98] sm:$0xff]  ;;  %v580_v8 = vld [vmem:[%s1367_s29 + $0xa0] sm:$0xff]  ;;  %v581_v10 = vld [vmem:[%s1367_s29 + $0xa8] sm:$0xff] }
  0x1c   : > { %v189_v7 = vld [vmem:[%s1367_s29 + $0x18] sm:$0xff]  ;;  %v190_v9 = vld [vmem:[%s1367_s29 + $0x20] sm:$0xff]  ;;  %v191_v11 = vld [vmem:[%s1367_s29 + $0x28] sm:$0xff] }
  0x1d   : > { %v582_v12 = vld [vmem:[%s1367_s29 + $0xb0] sm:$0xff]  ;;  %v583_v14 = vld [vmem:[%s1367_s29 + $0xb8] sm:$0xff]  ;;  %v584_v16 = vld [vmem:[%s1367_s29 + $0xc0] sm:$0xff] }
  0x1e   : > { %593 = vxpose.xlu1.b32.cont [2/16] (narrow) %v577_v2, 16  ;;  %v192_v13 = vld [vmem:[%s1367_s29 + $0x30] sm:$0xff]  ;;  %v193_v15 = vld [vmem:[%s1367_s29 + $0x38] sm:$0xff]  ;;  %v194_v17 = vld [vmem:[%s1367_s29 + $0x40] sm:$0xff] }
  0x1f   : > { %203 = vxpose.xlu0.b32.cont [2/16] (narrow) %v187_v3, 16  ;;  %v585_v18 = vld [vmem:[%s1367_s29 + $0xc8] sm:$0xff]  ;;  %v586_v20 = vld [vmem:[%s1367_s29 + $0xd0] sm:$0xff]  ;;  %v587_v22 = vld [vmem:[%s1367_s29 + $0xd8] sm:$0xff] }
  0x20   : > { %v195_v19 = vld [vmem:[%s1367_s29 + $0x48] sm:$0xff]  ;;  %v196_v21 = vld [vmem:[%s1367_s29 + $0x50] sm:$0xff]  ;;  %v197_v23 = vld [vmem:[%s1367_s29 + $0x58] sm:$0xff] }
  0x21   : > { %v588_v24 = vld [vmem:[%s1367_s29 + $0xe0] sm:$0xff]  ;;  %v589_v26 = vld [vmem:[%s1367_s29 + $0xe8] sm:$0xff]  ;;  %v590_v28 = vld [vmem:[%s1367_s29 + $0xf0] sm:$0xff] }
  0x22   : > { %594 = vxpose.xlu1.b32.cont [3/16] (narrow) %v578_v4, 16  ;;  %v198_v25 = vld [vmem:[%s1367_s29 + $0x60] sm:$0xff]  ;;  %v199_v27 = vld [vmem:[%s1367_s29 + $0x68] sm:$0xff]  ;;  %v200_v29 = vld [vmem:[%s1367_s29 + $0x70] sm:$0xff] }
  0x23   : > { %204 = vxpose.xlu0.b32.cont [3/16] (narrow) %v188_v5, 16  ;;  %v591_v30 = vld [vmem:[%s1367_s29 + $0xf8] sm:$0xff]  ;;  %v1534_v2 = vld [vmem:[%s2448_s1 + $0x120] sm:$0xff]  ;;  %v1540_v4 = vld [vmem:[%s2448_s1 + $0x130] sm:$0xff] }
  0x24   : > { %v201_v31 = vld [vmem:[%s1367_s29 + $0x78] sm:$0xff] }
  0x26   : > { %595 = vxpose.xlu1.b32.cont [4/16] (narrow) %v579_v6, 16 }
  0x27   : > { %205 = vxpose.xlu0.b32.cont [4/16] (narrow) %v189_v7, 16 }
  0x2a   : > { %596 = vxpose.xlu1.b32.cont [5/16] (narrow) %v580_v8, 16 }
  0x2b   : > { %206 = vxpose.xlu0.b32.cont [5/16] (narrow) %v190_v9, 16 }
  0x2e   : > { %597 = vxpose.xlu1.b32.cont [6/16] (narrow) %v581_v10, 16 }
  0x2f   : > { %207 = vxpose.xlu0.b32.cont [6/16] (narrow) %v191_v11, 16 }
  0x32   : > { %598 = vxpose.xlu1.b32.cont [7/16] (narrow) %v582_v12, 16 }
  0x33   : > { %208 = vxpose.xlu0.b32.cont [7/16] (narrow) %v192_v13, 16 }
  0x36   : > { %599 = vxpose.xlu1.b32.cont [8/16] (narrow) %v583_v14, 16  ;;  %v1559_v14 = vld [vmem:[%s2448_s1 + $0x180] sm:$0xff] }
  0x37   : > { %209 = vxpose.xlu0.b32.cont [8/16] (narrow) %v193_v15, 16  ;;  %v1564_v15 = vld [vmem:[%s2448_s1 + $0x190] sm:$0xff] }
  0x3a   : > { %600 = vxpose.xlu1.b32.cont [9/16] (narrow) %v584_v16, 16 }
  0x3b   : > { %210 = vxpose.xlu0.b32.cont [9/16] (narrow) %v194_v17, 16 }
  0x3e   : > { %601 = vxpose.xlu1.b32.cont [10/16] (narrow) %v585_v18, 16 }
  0x3f   : > { %211 = vxpose.xlu0.b32.cont [10/16] (narrow) %v195_v19, 16 }
  0x42   : > { %602 = vxpose.xlu1.b32.cont [11/16] (narrow) %v586_v20, 16  ;;  %v1571_v20 = vld [vmem:[%s2448_s1 + $0x140] sm:$0xff] }
  0x43   : > { %212 = vxpose.xlu0.b32.cont [11/16] (narrow) %v196_v21, 16 }
  0x46   : > { %603 = vxpose.xlu1.b32.cont [12/16] (narrow) %v587_v22, 16 }
  0x47   : > { %213 = vxpose.xlu0.b32.cont [12/16] (narrow) %v197_v23, 16 }
  0x4a   : > { %604 = vxpose.xlu1.b32.cont [13/16] (narrow) %v588_v24, 16 }
  0x4b   : > { %214 = vxpose.xlu0.b32.cont [13/16] (narrow) %v198_v25, 16  ;;  %v1580_v25 = vld [vmem:[%s2448_s1 + $0x1a0] sm:$0xff] }
  0x4e   : > { %605 = vxpose.xlu1.b32.cont [14/16] (narrow) %v589_v26, 16  ;;  %v1585_v26 = vld [vmem:[%s2448_s1 + $0x1b0] sm:$0xff] }
  0x4f   : > { %215 = vxpose.xlu0.b32.cont [14/16] (narrow) %v199_v27, 16 }
  0x52   : > { %606 = vxpose.xlu1.b32.cont [15/16] (narrow) %v590_v28, 16 }
  0x53   : > { %216 = vxpose.xlu0.b32.cont [15/16] (narrow) %v200_v29, 16 }
  0x56   : > { %607 = vxpose.xlu1.b32.end [16/16] (narrow) %v591_v30, 16 }
  0x57   : > { %217 = vxpose.xlu0.b32.end [16/16] (narrow) %v201_v31, 16 }
  0x9a   : > { %v608_v32 = vpop.trf.xlu1 }
  0x9b   : > { %v218_v33 = vpop.trf.xlu0  ;;  %v624_v34 = vmax.f32 %v608_v32, 1e-10  ;;  %v1602_v32 = vld [vmem:[%s2448_s1 + $0x150] sm:$0xff] }
  0x9c   : > { %v234_v35 = vmax.f32 %v218_v33, 1e-10 }
  0x9d   : > { %v1401_v36 = vmin.f32 %v624_v34, 1.0 }
  0x9e   : > { %v1438_v44 = vmin.f32 %v234_v35, 1.0 }
  0x9f   : > { %vm630_vm0 = vcmp.gt.f32.partialorder %v1401_v36, %v1406_v37  ;;  %vm634_vm1 = vcmp.gt.f32.partialorder %v1401_v36, %v1411_v38  ;;  %vm638_vm2 = vcmp.gt.f32.partialorder %v1401_v36, %v1416_v39  ;;  %vm642_vm3 = vcmp.gt.f32.partialorder %v1401_v36, %v1421_v40 }
  0xa0   : > { %vm646_vm4 = vcmp.gt.f32.partialorder %v1401_v36, %v1426_v41  ;;  %v668_v51 = vsub.f32 %v1401_v36, %v1406_v37  ;;  %v694_v52 = vsub.f32 %v1401_v36, %v1411_v38  ;;  %v720_v53 = vsub.f32 %v1401_v36, %v1416_v39  ;;  %vm1593_vm8 = vmxor %vm630_vm0, %vm634_vm1 }
  0xa1   : > { %v746_v54 = vsub.f32 %v1401_v36, %v1421_v40  ;;  %vm650_vm5 = vcmp.gt.f32.partialorder %v1401_v36, %v1431_v42  ;;  %v772_v60 = vsub.f32 %v1401_v36, %v1426_v41  ;;  %v1519_v61 = vsub.f32 %v1401_v36, %v1431_v42  ;;  %vm686_vm9 = vmxor %vm634_vm1, %vm638_vm2 }
  0xa2   : > { %v1523_v62 = vsub.f32 %v1401_v36, %v1436_v43  ;;  %v1527_v63 = vsub.f32 %v1401_v36, %v1445_v45  ;;  %v670_v0 = vmul.f32 %v1450_v46, %v668_v51  ;;  %v696_v1 = vmul.f32 %v1455_v47, %v694_v52  ;;  %vm1621_vm10 = vmxor %vm638_vm2, %vm642_vm3 }
  0xa3   : > { %v722_v3 = vmul.f32 %v1468_v48, %v720_v53  ;;  %v748_v5 = vmul.f32 %v1473_v49, %v746_v54  ;;  %v774_v6 = vmul.f32 %v1478_v50, %v772_v60  ;;  %v800_v7 = vmul.f32 %v1491_v55, %v1519_v61  ;;  %vm738_vm11 = vmxor %vm642_vm3, %vm646_vm4 }
  0xa4   : > { %v826_v8 = vmul.f32 %v1496_v56, %v1523_v62  ;;  %v1550_v9 = vmul.f32 %v1501_v57, %v1527_v63  ;;  %vm654_vm6 = vcmp.gt.f32.partialorder %v1401_v36, %v1436_v43  ;;  %v672_v10 = vadd.f32 %v1508_v58, %v670_v0  ;;  %vm1667_vm12 = vmxor %vm646_vm4, %vm650_vm5 }
  0xa5   : > { %v678_v11 = vadd.f32 %v670_v0, %v670_v0  ;;  %v698_v12 = vadd.f32 %v1513_v59, %v696_v1  ;;  %v704_v13 = vadd.f32 %v696_v1, %v696_v1  ;;  %v724_v16 = vadd.f32 %v1534_v2, %v722_v3  ;;  %v1630_v1 = vld [vmem:[%s2448_s1 + $0x1c0] sm:$0xff]  ;;  %vm790_vm13 = vmxor %vm650_vm5, %vm654_vm6 }
  0xa6   : > { %v730_v17 = vadd.f32 %v722_v3, %v722_v3  ;;  %v750_v18 = vadd.f32 %v1540_v4, %v748_v5  ;;  %v756_v19 = vadd.f32 %v748_v5, %v748_v5  ;;  %vm658_vm7 = vcmp.gt.f32.partialorder %v1401_v36, %v1445_v45  ;;  %v1635_v5 = vld [vmem:[%s2448_s1 + $0x160] sm:$0xff] }
  0xa7   : > { %v674_v21 = vmul.f32 %v672_v10, %v668_v51  ;;  %v680_v22 = vadd.f32 %v1508_v58, %v678_v11  ;;  %v700_v23 = vmul.f32 %v698_v12, %v694_v52  ;;  %v706_v24 = vadd.f32 %v1513_v59, %v704_v13  ;;  %vm1712_vm14 = vmxor %vm654_vm6, %vm658_vm7 }
  0xa8   : > { %v726_v28 = vmul.f32 %v724_v16, %v720_v53  ;;  %v732_v29 = vadd.f32 %v1534_v2, %v730_v17  ;;  %v752_v30 = vmul.f32 %v750_v18, %v746_v54  ;;  %v758_v31 = vadd.f32 %v1540_v4, %v756_v19  ;;  %v1652_v18 = vld [vmem:[%s2448_s1 + $0x1d0] sm:$0xff] }
  0xa9   : > { %v676_v33 = vadd.f32 %v1559_v14, %v674_v21  ;;  %v684_v34 = vsel %vm1593_vm8, %v680_v22, 0.0  ;;  %v702_v35 = vadd.f32 %v1564_v15, %v700_v23  ;;  %v776_v51 = vadd.f32 %v1571_v20, %v774_v6  ;;  %v1657_v21 = vld [vmem:[%s2448_s1 + $0x170] sm:$0xff] }
  0xaa   : > { %v710_v52 = vsel %vm686_vm9, %v706_v24, %v684_v34  ;;  %v728_v54 = vadd.f32 %v1580_v25, %v726_v28  ;;  %v754_v0 = vadd.f32 %v1585_v26, %v752_v30  ;;  %v782_v3 = vadd.f32 %v774_v6, %v774_v6  ;;  %v1680_v30 = vld [vmem:[%s2448_s1 + $0x1e0] sm:$0xff] }
  0xab   : > { %v682_v10 = vsel %vm1593_vm8, %v676_v33, 0.0  ;;  %v736_v11 = vsel %vm1621_vm10, %v732_v29, %v710_v52  ;;  %v778_v12 = vmul.f32 %v776_v51, %v772_v60  ;;  %v802_v6 = vadd.f32 %v1602_v32, %v800_v7  ;;  %v1682_v33 = vpop.trf.xlu1 }
  0xac   : > { %v708_v13 = vsel %vm686_vm9, %v702_v35, %v682_v10  ;;  %v762_v16 = vsel %vm738_vm11, %v758_v31, %v736_v11  ;;  %v784_v17 = vadd.f32 %v1571_v20, %v782_v3  ;;  %v808_v19 = vadd.f32 %v800_v7, %v800_v7 }
  0xad   : > { %v734_v60 = vsel %vm1621_vm10, %v728_v54, %v708_v13  ;;  %v780_v7 = vadd.f32 %v1630_v1, %v778_v12  ;;  %v804_v23 = vmul.f32 %v802_v6, %v1519_v61  ;;  %v828_v24 = vadd.f32 %v1635_v5, %v826_v8 }
  0xae   : > { %v760_v27 = vsel %vm738_vm11, %v754_v0, %v734_v60  ;;  %v788_v28 = vsel %vm1667_vm12, %v784_v17, %v762_v16  ;;  %v810_v29 = vadd.f32 %v1602_v32, %v808_v19  ;;  %v834_v31 = vadd.f32 %v826_v8, %v826_v8  ;;  %v1699_v8 = vld [vmem:[%s2448_s1 + $0x1f0] sm:$0xff] }
  0xaf   : > { %v786_v34 = vsel %vm1667_vm12, %v780_v7, %v760_v27  ;;  %v806_v61 = vadd.f32 %v1652_v18, %v804_v23  ;;  %v830_v35 = vmul.f32 %v828_v24, %v1523_v62  ;;  %v852_v51 = vadd.f32 %v1657_v21, %v1550_v9 }
  0xb0   : > { %v858_v52 = vadd.f32 %v1550_v9, %v1550_v9  ;;  %v814_v62 = vsel %vm790_vm13, %v810_v29, %v788_v28  ;;  %v625_v3 = vmax.f32 %v1682_v33, 1e-10  ;;  %v836_v9 = vadd.f32 %v1635_v5, %v834_v31 }
  0xb1   : > { %v812_v53 = vsel %vm790_vm13, %v806_v61, %v786_v34  ;;  %v832_v54 = vadd.f32 %v1680_v30, %v830_v35  ;;  %v854_v0 = vmul.f32 %v852_v51, %v1527_v63  ;;  %vm240_vm15 = vcmp.gt.f32.partialorder %v1438_v44, %v1406_v37 }
  0xb2   : > { %vm245_vm0 = vcmp.gt.f32.partialorder %v1438_v44, %v1411_v38  ;;  %v840_v63 = vsel %vm1712_vm14, %v836_v9, %v814_v62  ;;  %v860_v6 = vadd.f32 %v1657_v21, %v858_v52  ;;  %vm250_vm1 = vcmp.gt.f32.partialorder %v1438_v44, %v1416_v39 }
  0xb3   : > { %v838_v11 = vsel %vm1712_vm14, %v832_v54, %v812_v53  ;;  %v856_v12 = vadd.f32 %v1699_v8, %v854_v0  ;;  %v288_v13 = vsub.f32 %v1438_v44, %v1406_v37  ;;  %vm255_vm2 = vcmp.gt.f32.partialorder %v1438_v44, %v1421_v40  ;;  %vm306_vm8 = vmxor %vm245_vm0, %vm250_vm1 }
  0xb4   : > { %v317_v17 = vsub.f32 %v1438_v44, %v1411_v38  ;;  %v346_v19 = vsub.f32 %v1438_v44, %v1416_v39  ;;  %vm260_vm3 = vcmp.gt.f32.partialorder %v1438_v44, %v1426_v41  ;;  %v375_v22 = vsub.f32 %v1438_v44, %v1421_v40  ;;  %vm1797_vm9 = vmxor %vm250_vm1, %vm255_vm2 }
  0xb5   : > { %v862_v16 = vsel %vm658_vm7, %v856_v12, %v838_v11  ;;  %v290_v60 = vmul.f32 %v1450_v46, %v288_v13  ;;  %v404_v7 = vsub.f32 %v1438_v44, %v1426_v41  ;;  %v864_v23 = vsel %vm658_vm7, %v860_v6, %v840_v63  ;;  %vm1775_vm7 = vmxor %vm240_vm15, %vm245_vm0 }
  0xb6   : > { %870 = vxpose.xlu1.b32.start [1/2] (short) %v862_v16, 128  ;;  %vm265_vm4 = vcmp.gt.f32.partialorder %v1438_v44, %v1431_v42  ;;  %v319_v24 = vmul.f32 %v1455_v47, %v317_v17  ;;  %v348_v27 = vmul.f32 %v1468_v48, %v346_v19  ;;  %v433_v46 = vsub.f32 %v1438_v44, %v1431_v42  ;;  %vm364_vm10 = vmxor %vm255_vm2, %vm260_vm3 }
  0xb7   : > { %v292_v28 = vadd.f32 %v1508_v58, %v290_v60  ;;  %v298_v29 = vadd.f32 %v290_v60, %v290_v60  ;;  %v377_v31 = vmul.f32 %v1473_v49, %v375_v22  ;;  %v462_v34 = vsub.f32 %v1438_v44, %v1436_v43  ;;  %vm1829_vm11 = vmxor %vm260_vm3, %vm265_vm4 }
  0xb8   : > { %vm270_vm5 = vcmp.gt.f32.partialorder %v1438_v44, %v1436_v43  ;;  %v321_v36 = vadd.f32 %v1513_v59, %v319_v24  ;;  %v327_v61 = vadd.f32 %v319_v24, %v319_v24  ;;  %v350_v47 = vadd.f32 %v1534_v2, %v348_v27 }
  0xb9   : > { %v406_v48 = vmul.f32 %v1478_v50, %v404_v7  ;;  %vm275_vm6 = vcmp.gt.f32.partialorder %v1438_v44, %v1445_v45  ;;  %v294_v35 = vmul.f32 %v292_v28, %v288_v13  ;;  %v300_v51 = vadd.f32 %v1508_v58, %v298_v29  ;;  %vm422_vm12 = vmxor %vm265_vm4, %vm270_vm5 }
  0xba   : > { %v356_v49 = vadd.f32 %v348_v27, %v348_v27  ;;  %v379_v52 = vadd.f32 %v1540_v4, %v377_v31  ;;  %v323_v50 = vmul.f32 %v321_v36, %v317_v17  ;;  %v329_v62 = vadd.f32 %v1513_v59, %v327_v61  ;;  %v1843_v36 = vpop.trf.xlu0  ;;  %vm1863_vm13 = vmxor %vm270_vm5, %vm275_vm6 }
  0xbb   : > { %v352_v54 = vmul.f32 %v350_v47, %v346_v19  ;;  %v385_v0 = vadd.f32 %v377_v31, %v377_v31  ;;  %v296_v58 = vadd.f32 %v1559_v14, %v294_v35  ;;  %v304_v10 = vsel %vm1775_vm7, %v300_v51, 0.0  ;;  %v1884_v47 = vld [vmem:[%s2448_s1 + $0x28] sm:$0xff] }
  0xbc   : > { %v358_v37 = vadd.f32 %v1534_v2, %v356_v49  ;;  %v381_v9 = vmul.f32 %v379_v52, %v375_v22  ;;  %v325_v11 = vadd.f32 %v1564_v15, %v323_v50  ;;  %v333_v59 = vsel %vm306_vm8, %v329_v62, %v304_v10  ;;  %v1891_v52 = vld [vmem:[%s2448_s1 + $0x38] sm:$0xff]  ;;  %v1913_v62 = vld [vmem:[%s2448_s1 + $0x88] sm:$0xff] }
  0xbd   : > { %v354_v12 = vadd.f32 %v1580_v25, %v352_v54  ;;  %v387_v38 = vadd.f32 %v1540_v4, %v385_v0  ;;  %v302_v2 = vsel %vm1775_vm7, %v296_v58, 0.0  ;;  %v408_v63 = vadd.f32 %v1571_v20, %v406_v48  ;;  %v1908_v50 = vld [vmem:[%s2448_s1 + $0x58] sm:$0xff] }
  0xbe   : > { %v362_v15 = vsel %vm1797_vm9, %v358_v37, %v333_v59  ;;  %v383_v39 = vadd.f32 %v1585_v26, %v381_v9  ;;  %v331_v25 = vsel %vm306_vm8, %v325_v11, %v302_v2  ;;  %v414_v4 = vadd.f32 %v406_v48, %v406_v48  ;;  %v1928_v10 = vld [vmem:[%s2448_s1 + $0x98] sm:$0xff]  ;;  %v1945_v9 = vld [vmem:[%s2448_s1 + $0x108] sm:$0xff] }
  0xbf   : > { %v391_v6 = vsel %vm364_vm10, %v387_v38, %v362_v15  ;;  %v435_v13 = vmul.f32 %v1491_v55, %v433_v46  ;;  %v360_v16 = vsel %vm1797_vm9, %v354_v12, %v331_v25  ;;  %v410_v17 = vmul.f32 %v408_v63, %v404_v7  ;;  %v1938_v37 = vld [vmem:[%s2448_s1 + $0xb8] sm:$0xff]  ;;  %v1956_v12 = vld [vmem:[%s2448_s1 + $0xc8] sm:$0xff] }
  0xc0   : > { %v464_v19 = vmul.f32 %v1496_v56, %v462_v34  ;;  %v489_v60 = vsub.f32 %v1438_v44, %v1445_v45  ;;  %v389_v40 = vsel %vm364_vm10, %v383_v39, %v360_v16  ;;  %v416_v22 = vadd.f32 %v1571_v20, %v414_v4  ;;  %v1965_v15 = vld [vmem:[%s2448_s1 + $0x118] sm:$0xff]  ;;  %v1970_v39 = vld [vmem:[%s2448_s1 + $0x128] sm:$0xff] }
  0xc1   : > { %v437_v26 = vadd.f32 %v1602_v32, %v435_v13  ;;  %v443_v24 = vadd.f32 %v435_v13, %v435_v13  ;;  %v412_v56 = vadd.f32 %v1630_v1, %v410_v17  ;;  %v1838_v28 = vmin.f32 %v625_v3, 1.0  ;;  %v1977_v44 = vld [vmem:[%s2448_s1 + $0xd8] sm:$0xff] }
  0xc2   : > { %v466_v7 = vadd.f32 %v1635_v5, %v464_v19  ;;  %v472_v27 = vadd.f32 %v464_v19, %v464_v19  ;;  %v491_v20 = vmul.f32 %v1501_v57, %v489_v60  ;;  %v420_v29 = vsel %vm1829_vm11, %v416_v22, %v391_v6  ;;  %v1988_v4 = vld [vmem:[%s2448_s1 + $0x138] sm:$0xff] }
  0xc3   : > { %v439_v31 = vmul.f32 %v437_v26, %v433_v46  ;;  %v445_v41 = vadd.f32 %v1602_v32, %v443_v24  ;;  %v1845_v61 = vadd.f32 7e-10, %v864_v23  ;;  %v418_v1 = vsel %vm1829_vm11, %v412_v56, %v389_v40 }
  0xc4   : > { %v468_v57 = vmul.f32 %v466_v7, %v462_v34  ;;  %v474_v33 = vadd.f32 %v1635_v5, %v472_v27  ;;  %v493_v46 = vadd.f32 %v1657_v21, %v491_v20  ;;  %v499_v42 = vadd.f32 %v491_v20, %v491_v20  ;;  %v1871_v5 = vld [vmem:[%s2448_s1 + $0x8] sm:$0xff]  ;;  %v2007_v7 = vld [vmem:[%s2448_s1 + $0x198] sm:$0xff] }
  0xc5   : > { %v441_v3 = vadd.f32 %v1652_v18, %v439_v31  ;;  %v449_v32 = vsel %vm422_vm12, %v445_v41, %v420_v29  ;;  %v1876_v18 = vld [vmem:[%s2448_s1 + $0x18] sm:$0xff]  ;;  %v235_v48 = vmax.f32 %v1843_v36, 1e-10  ;;  %vm631_vm14 = vcmp.gt.f32.partialorder %v1838_v28, %v1871_v5  ;;  %v2012_v27 = vld [vmem:[%s2448_s1 + $0x1a8] sm:$0xff] }
  0xc6   : > { %v470_v34 = vadd.f32 %v1680_v30, %v468_v57  ;;  %v478_v43 = vsel %vm1863_vm13, %v474_v33, %v449_v32  ;;  %v495_v51 = vmul.f32 %v493_v46, %v489_v60  ;;  %v501_v49 = vadd.f32 %v1657_v21, %v499_v42  ;;  %v1903_v21 = vld [vmem:[%s2448_s1 + $0x48] sm:$0xff]  ;;  %v2029_v33 = vld [vmem:[%s2448_s1 + $0x1b8] sm:$0xff] }
  0xc7   : > { %v447_v35 = vsel %vm422_vm12, %v441_v3, %v418_v1  ;;  %v868_v30 = vmax.f32 %v1845_v61, 1e-10  ;;  %vm635_vm15 = vcmp.gt.f32.partialorder %v1838_v28, %v1876_v18  ;;  %vm639_vm0 = vcmp.gt.f32.partialorder %v1838_v28, %v1884_v47  ;;  %v1998_v60 = vld [vmem:[%s2448_s1 + $0x188] sm:$0xff]  ;;  %v2142_v36 = vld [vmem:[%s2448_s1 + $0x1d8] sm:$0xff] }
  0xc8   : > { %v476_v53 = vsel %vm1863_vm13, %v470_v34, %v447_v35  ;;  %v497_v54 = vadd.f32 %v1699_v8, %v495_v51  ;;  %v1919_v0 = vsel %vm275_vm6, %v501_v49, %v478_v43  ;;  %v669_v58 = vsub.f32 %v1838_v28, %v1871_v5  ;;  %v1933_v8 = vld [vmem:[%s2448_s1 + $0xa8] sm:$0xff]  ;;  %vm2021_vm4 = vmxor %vm631_vm14, %vm635_vm15  ;;  %v2053_v35 = vld [vmem:[%s2448_s1 + $0x158] sm:$0xff] }
  0xc9   : > { %vm643_vm1 = vcmp.gt.f32.partialorder %v1838_v28, %v1891_v52  ;;  %v695_v11 = vsub.f32 %v1838_v28, %v1876_v18  ;;  %v721_v59 = vsub.f32 %v1838_v28, %v1884_v47  ;;  %v747_v14 = vsub.f32 %v1838_v28, %v1891_v52  ;;  %v2034_v32 = vld [vmem:[%s2448_s1 + $0x148] sm:$0xff]  ;;  %vm2045_vm5 = vmxor %vm635_vm15, %vm639_vm0 }
  0xca   : > { %v503_v38 = vsel %vm275_vm6, %v497_v54, %v476_v53  ;;  %v671_v2 = vmul.f32 %v1913_v62, %v669_v58  ;;  %v773_v63 = vsub.f32 %v1838_v28, %v1903_v21  ;;  %v799_v45 = vsub.f32 %v1838_v28, %v1908_v50  ;;  %v2058_v51 = vld [vmem:[%s2448_s1 + $0x68] sm:$0xff]  ;;  %vm2069_vm6 = vmxor %vm639_vm0, %vm643_vm1 }
  0xcb   : > { %511 = vxpose.xlu0.b32.start [1/2] (short) %v503_v38, 128  ;;  %vm647_vm2 = vcmp.gt.f32.partialorder %v1838_v28, %v1903_v21  ;;  %v697_v25 = vmul.f32 %v1928_v10, %v695_v11  ;;  %v723_v6 = vmul.f32 %v1933_v8, %v721_v59  ;;  %v749_v13 = vmul.f32 %v1938_v37, %v747_v14 }
  0xcc   : > { %vm651_vm3 = vcmp.gt.f32.partialorder %v1838_v28, %v1908_v50  ;;  %v673_v16 = vadd.f32 %v1945_v9, %v671_v2  ;;  %v679_v17 = vadd.f32 %v671_v2, %v671_v2  ;;  %v775_v19 = vmul.f32 %v1956_v12, %v773_v63  ;;  %vm739_vm7 = vmxor %vm643_vm1, %vm647_vm2 }
  0xcd   : > { %v699_v40 = vadd.f32 %v1965_v15, %v697_v25  ;;  %v705_v22 = vadd.f32 %v697_v25, %v697_v25  ;;  %v725_v26 = vadd.f32 %v1970_v39, %v723_v6  ;;  %v801_v24 = vmul.f32 %v1977_v44, %v799_v45  ;;  %vm2134_vm9 = vmxor %vm647_vm2, %vm651_vm3 }
  0xce   : > { %v675_v55 = vmul.f32 %v673_v16, %v669_v58  ;;  %v681_v56 = vadd.f32 %v1945_v9, %v679_v17  ;;  %v731_v20 = vadd.f32 %v723_v6, %v723_v6  ;;  %v751_v29 = vadd.f32 %v1988_v4, %v749_v13  ;;  %v2097_v16 = vld [vmem:[%s2448_s1 + $0x1c8] sm:$0xff] }
  0xcf   : > { %v701_v41 = vmul.f32 %v699_v40, %v695_v11  ;;  %v707_v1 = vadd.f32 %v1965_v15, %v705_v22  ;;  %v727_v57 = vmul.f32 %v725_v26, %v721_v59  ;;  %v757_v3 = vadd.f32 %v749_v13, %v749_v13  ;;  %v2078_v59 = vld [vmem:[%s2448_s1 + $0x78] sm:$0xff]  ;;  %v2103_v22 = vld [vmem:[%s2448_s1 + $0xe8] sm:$0xff] }
  0xd0   : > { %v677_v23 = vadd.f32 %v1998_v60, %v675_v55  ;;  %v685_v46 = vsel %vm2021_vm4, %v681_v56, 0.0  ;;  %v733_v34 = vadd.f32 %v1970_v39, %v731_v20  ;;  %v753_v43 = vmul.f32 %v751_v29, %v747_v14  ;;  %v2112_v29 = vld [vmem:[%s2448_s1 + $0xf8] sm:$0xff] }
  0xd1   : > { %v703_v49 = vadd.f32 %v2007_v7, %v701_v41  ;;  %v711_v53 = vsel %vm2045_vm5, %v707_v1, %v685_v46  ;;  %v729_v58 = vadd.f32 %v2012_v27, %v727_v57  ;;  %v759_v11 = vadd.f32 %v1988_v4, %v757_v3  ;;  %v2118_v1 = vld [vmem:[%s2448_s1 + $0x168] sm:$0xff]  ;;  %v2148_v3 = vld [vmem:[%s2448_s1 + $0x178] sm:$0xff] }
  0xd2   : > { %v683_v14 = vsel %vm2021_vm4, %v677_v23, 0.0  ;;  %v737_v38 = vsel %vm2069_vm6, %v733_v34, %v711_v53  ;;  %v755_v2 = vadd.f32 %v2029_v33, %v753_v43  ;;  %v777_v25 = vadd.f32 %v2034_v32, %v775_v19 }
  0xd3   : > { %v709_v6 = vsel %vm2045_vm5, %v703_v49, %v683_v14  ;;  %v763_v13 = vsel %vm739_vm7, %v759_v11, %v737_v38  ;;  %v783_v17 = vadd.f32 %v775_v19, %v775_v19  ;;  %v803_v40 = vadd.f32 %v2053_v35, %v801_v24  ;;  %v2180_v14 = vld [vmem:[%s2448_s1 + $0x1f8] sm:$0xff] }
  0xd4   : > { %v735_v26 = vsel %vm2069_vm6, %v729_v58, %v709_v6  ;;  %v779_v55 = vmul.f32 %v777_v25, %v773_v63  ;;  %v809_v56 = vadd.f32 %v801_v24, %v801_v24  ;;  %v825_v20 = vsub.f32 %v1838_v28, %v2058_v51 }
  0xd5   : > { %v761_v19 = vsel %vm739_vm7, %v755_v2, %v735_v26  ;;  %v785_v31 = vadd.f32 %v2034_v32, %v783_v17  ;;  %v805_v41 = vmul.f32 %v803_v40, %v799_v45  ;;  %v849_v63 = vsub.f32 %v1838_v28, %v2078_v59 }
  0xd6   : > { %v2124_v24 = vmin.f32 %v235_v48, 1.0  ;;  %vm655_vm8 = vcmp.gt.f32.partialorder %v1838_v28, %v2058_v51  ;;  %v781_v57 = vadd.f32 %v2097_v16, %v779_v55  ;;  %v827_v48 = vmul.f32 %v2103_v22, %v825_v20 }
  0xd7   : > { %1217 = vlog2.f32 %v868_v30  ;;  %vm659_vm10 = vcmp.gt.f32.partialorder %v1838_v28, %v2078_v59  ;;  %v789_v23 = vsel %vm2134_vm9, %v785_v31, %v763_v13  ;;  %v851_v46 = vmul.f32 %v2112_v29, %v849_v63  ;;  %vm791_vm11 = vmxor %vm651_vm3, %vm655_vm8  ;;  %v2174_v30 = vld [vmem:[%s2448_s1 + $0x1e8] sm:$0xff] }
  0xd8   : > { %v2158_v42 = vadd.f32 7e-10, %v1919_v0  ;;  %v787_v34 = vsel %vm2134_vm9, %v781_v57, %v761_v19  ;;  %v811_v43 = vadd.f32 %v2053_v35, %v809_v56  ;;  %v829_v49 = vadd.f32 %v2118_v1, %v827_v48  ;;  %vm817_vm15 = vmxor %vm655_vm8, %vm659_vm10 }
  0xd9   : > { %v807_v61 = vadd.f32 %v2142_v36, %v805_v41  ;;  %v835_v0 = vadd.f32 %v827_v48, %v827_v48  ;;  %v853_v53 = vadd.f32 %v2148_v3, %v851_v46  ;;  %v859_v54 = vadd.f32 %v851_v46, %v851_v46 }
  0xda   : > { %v815_v58 = vsel %vm791_vm11, %v811_v43, %v789_v23  ;;  %v831_v11 = vmul.f32 %v829_v49, %v825_v20  ;;  %vm241_vm12 = vcmp.gt.f32.partialorder %v2124_v24, %v1871_v5  ;;  %vm246_vm13 = vcmp.gt.f32.partialorder %v2124_v24, %v1876_v18 }
  0xdb   : > { %v813_v38 = vsel %vm791_vm11, %v807_v61, %v787_v34  ;;  %v837_v2 = vadd.f32 %v2118_v1, %v835_v0  ;;  %v855_v25 = vmul.f32 %v853_v53, %v849_v63  ;;  %vm251_vm14 = vcmp.gt.f32.partialorder %v2124_v24, %v1884_v47  ;;  %vm2237_vm4 = vmxor %vm241_vm12, %vm246_vm13 }
  0xdc   : > { %v833_v6 = vadd.f32 %v2174_v30, %v831_v11  ;;  %v861_v13 = vadd.f32 %v2148_v3, %v859_v54  ;;  %vm256_vm0 = vcmp.gt.f32.partialorder %v2124_v24, %v1891_v52  ;;  %v289_v17 = vsub.f32 %v2124_v24, %v1871_v5  ;;  %vm307_vm5 = vmxor %vm246_vm13, %vm251_vm14 }
  0xdd   : > { %v841_v40 = vsel %vm817_vm15, %v837_v2, %v815_v58  ;;  %v857_v26 = vadd.f32 %v2180_v14, %v855_v25  ;;  %vm261_vm1 = vcmp.gt.f32.partialorder %v2124_v24, %v1903_v21  ;;  %v318_v55 = vsub.f32 %v2124_v24, %v1876_v18  ;;  %vm2259_vm6 = vmxor %vm251_vm14, %vm256_vm0 }
  0xde   : > { %v347_v56 = vsub.f32 %v2124_v24, %v1884_v47  ;;  %v839_v20 = vsel %vm817_vm15, %v833_v6, %v813_v38  ;;  %v865_v19 = vsel %vm659_vm10, %v861_v13, %v841_v40  ;;  %v291_v31 = vmul.f32 %v1913_v62, %v289_v17  ;;  %vm365_vm7 = vmxor %vm256_vm0, %vm261_vm1 }
  0xdf   : > { %v376_v41 = vsub.f32 %v2124_v24, %v1891_v52  ;;  %v863_v63 = vsel %vm659_vm10, %v857_v26, %v839_v20  ;;  %v867_v45 = vadd.f32 7e-10, %v865_v19  ;;  %v320_v57 = vmul.f32 %v1928_v10, %v318_v55 }
  0xe0   : > { %v349_v48 = vmul.f32 %v1933_v8, %v347_v56  ;;  %871 = vxpose.xlu1.b32.end [2/2] (short) %v863_v63, 128  ;;  %vm266_vm2 = vcmp.gt.f32.partialorder %v2124_v24, %v1908_v50  ;;  %v293_v23 = vadd.f32 %v1945_v9, %v291_v31  ;;  %v299_v46 = vadd.f32 %v291_v31, %v291_v31 }
  0xe1   : > { %v378_v62 = vmul.f32 %v1938_v37, %v376_v41  ;;  %v405_v34 = vsub.f32 %v2124_v24, %v1903_v21  ;;  %v1218_v43 = vpop.eup %1217  ;;  %v869_v28 = vmax.f32 %v867_v45, 1e-10  ;;  %v322_v49 = vadd.f32 %v1965_v15, %v320_v57  ;;  %vm2298_vm9 = vmxor %vm261_vm1, %vm266_vm2 }
  0xe2   : > { %v328_v61 = vadd.f32 %v320_v57, %v320_v57  ;;  %v351_v10 = vadd.f32 %v1970_v39, %v349_v48  ;;  %v295_v8 = vmul.f32 %v293_v23, %v289_v17  ;;  %v301_v0 = vadd.f32 %v1945_v9, %v299_v46 }
  0xe3   : > { %v357_v53 = vadd.f32 %v349_v48, %v349_v48  ;;  %v380_v54 = vadd.f32 %v1988_v4, %v378_v62  ;;  %1219 = vlog2.f32 %v869_v28  ;;  %vm271_vm3 = vcmp.gt.f32.partialorder %v2124_v24, %v2058_v51 }
  0xe4   : > { %v324_v58 = vmul.f32 %v322_v49, %v318_v55  ;;  %v330_v9 = vadd.f32 %v1965_v15, %v328_v61  ;;  %v353_v11 = vmul.f32 %v351_v10, %v347_v56  ;;  %v297_v38 = vadd.f32 %v1998_v60, %v295_v8  ;;  %vm423_vm10 = vmxor %vm266_vm2, %vm271_vm3 }
  0xe5   : > { %v305_v2 = vsel %vm2237_vm4, %v301_v0, 0.0  ;;  %v359_v5 = vadd.f32 %v1970_v39, %v357_v53  ;;  %v382_v25 = vmul.f32 %v380_v54, %v376_v41  ;;  %v386_v18 = vadd.f32 %v378_v62, %v378_v62 }
  0xe6   : > { %v326_v6 = vadd.f32 %v2007_v7, %v324_v58  ;;  %v334_v13 = vsel %vm307_vm5, %v330_v9, %v305_v2  ;;  %v355_v60 = vadd.f32 %v2012_v27, %v353_v11  ;;  %v303_v39 = vsel %vm2237_vm4, %v297_v38, 0.0 }
  0xe7   : > { %v363_v7 = vsel %vm2259_vm6, %v359_v5, %v334_v13  ;;  %v384_v17 = vadd.f32 %v2029_v33, %v382_v25  ;;  %v407_v40 = vmul.f32 %v1956_v12, %v405_v34  ;;  %v388_v47 = vadd.f32 %v1988_v4, %v386_v18 }
  0xe8   : > { %v332_v26 = vsel %vm307_vm5, %v326_v6, %v303_v39  ;;  %v434_v55 = vsub.f32 %v2124_v24, %v1908_v50  ;;  %v463_v27 = vsub.f32 %v2124_v24, %v2058_v51  ;;  %v490_v4 = vsub.f32 %v2124_v24, %v2078_v59 }
  0xe9   : > { %v361_v56 = vsel %vm2259_vm6, %v355_v60, %v332_v26  ;;  %v409_v12 = vadd.f32 %v2034_v32, %v407_v40  ;;  %v415_v33 = vadd.f32 %v407_v40, %v407_v40  ;;  %vm276_vm8 = vcmp.gt.f32.partialorder %v2124_v24, %v2078_v59 }
  0xea   : > { %v392_v20 = vsel %vm365_vm7, %v388_v47, %v363_v7  ;;  %v436_v19 = vmul.f32 %v1977_v44, %v434_v55  ;;  %v465_v31 = vmul.f32 %v2103_v22, %v463_v27  ;;  %v390_v41 = vsel %vm365_vm7, %v384_v17, %v361_v56  ;;  %vm452_vm11 = vmxor %vm271_vm3, %vm276_vm8 }
  0xeb   : > { %v411_v63 = vmul.f32 %v409_v12, %v405_v34  ;;  %v417_v45 = vadd.f32 %v2034_v32, %v415_v33  ;;  %v492_v52 = vmul.f32 %v2112_v29, %v490_v4  ;;  %v919_v21 = vmul.f32 0.6931472, %v1218_v43 }
  0xec   : > { %v438_v44 = vadd.f32 %v2053_v35, %v436_v19  ;;  %v444_v48 = vadd.f32 %v436_v19, %v436_v19  ;;  %v467_v22 = vadd.f32 %v2118_v1, %v465_v31  ;;  %v473_v23 = vadd.f32 %v465_v31, %v465_v31 }
  0xed   : > { %v413_v32 = vadd.f32 %v2097_v16, %v411_v63  ;;  %v421_v29 = vsel %vm2298_vm9, %v417_v45, %v392_v20  ;;  %v494_v46 = vadd.f32 %v2148_v3, %v492_v52  ;;  %v500_v62 = vadd.f32 %v492_v52, %v492_v52  ;;  %v1220_v34 = vpop.eup %1219 }
  0xee   : > { %v440_v28 = vmul.f32 %v438_v44, %v434_v55  ;;  %v446_v49 = vadd.f32 %v2053_v35, %v444_v48  ;;  %v469_v61 = vmul.f32 %v467_v22, %v463_v27  ;;  %v921_v10 = vmul.f32 0.6931472, %v1220_v34 }
  0xef   : > { %v419_v8 = vsel %vm2298_vm9, %v413_v32, %v390_v41  ;;  %v475_v16 = vadd.f32 %v2118_v1, %v473_v23  ;;  %v496_v0 = vmul.f32 %v494_v46, %v490_v4  ;;  %v502_v35 = vadd.f32 %v2148_v3, %v500_v62 }
  0xf0   : > { %v442_v43 = vadd.f32 %v2142_v36, %v440_v28  ;;  %v450_v53 = vsel %vm423_vm10, %v446_v49, %v421_v29  ;;  %v509_v54 = vmax.f32 %v2158_v42, 1e-10  ;;  %v922_v50 = vadd.f32 %v921_v10, %v919_v21 }
  0xf1   : > { %v471_v37 = vadd.f32 %v2174_v30, %v469_v61  ;;  %v479_v1 = vsel %vm452_vm11, %v475_v16, %v450_v53  ;;  %v498_v36 = vadd.f32 %v2180_v14, %v496_v0  ;;  %v571_v5 = vlaneseq }
  0xf2   : > { %v448_v58 = vsel %vm423_vm10, %v442_v43, %v419_v8  ;;  %v506_v9 = vsel %vm276_vm8, %v502_v35, %v479_v1  ;;  %v923_v11 = vrot.slane %v922_v50, 4  ;;  %1221 = vlog2.f32 %v509_v54 }
  0xf3   : > { %v477_v38 = vsel %vm452_vm11, %v471_v37, %v448_v58  ;;  %v508_v51 = vadd.f32 7e-10, %v506_v9  ;;  %vm573_vm12 = vcmp.lt.s32.totalorder %v571_v5, 128 }
  0xf4   : > { %v504_v3 = vsel %vm276_vm8, %v498_v36, %v477_v38  ;;  %v924_v2 = vadd.f32 %v923_v11, %v922_v50 }
  0xf5   : > { %v510_v42 = vmax.f32 %v508_v51, 1e-10  ;;  %512 = vxpose.xlu0.b32.end [2/2] (short) %v504_v3, 128 }
  0xf6   : > { %v925_v30 = vrot.slane %v924_v2, 2 }
  0xf7   : > { %1223 = vlog2.f32 %v510_v42 }
  0xf8   : > { %v926_v14 = vadd.f32 %v925_v30, %v924_v2 }
  0xfa   : > { %v927_v25 = vrot.slane %v926_v14, 1 }
  0xfc   : > { %v928_v6 = vadd.f32 %v927_v25, %v926_v14  ;;  %v1222_v13 = vpop.eup %1221 }
  0xfd   : > { %v561_v59 = vmul.f32 0.6931472, %v1222_v13 }
  0xfe   : > { %929 = vst.msk [vmem:[%s172_s5 + $0x1] sm:$0x1] %vm573_vm12, %v928_v6 }
 0x101   : > { %v1224_v15 = vpop.eup %1223 }
 0x102   : > { %v563_v24 = vmul.f32 0.6931472, %v1224_v15 }
 0x104   : > { %v564_v60 = vadd.f32 %v563_v24, %v561_v59 }
 0x106   : > { %v565_v18 = vrot.slane %v564_v60, 4 }
 0x108   : > { %v566_v39 = vadd.f32 %v565_v18, %v564_v60 }
 0x10a   : > { %v567_v7 = vrot.slane %v566_v39, 2 }
 0x10c   : > { %v568_v17 = vadd.f32 %v567_v7, %v566_v39 }
 0x10e   : > { %v569_v40 = vrot.slane %v568_v17, 1 }
 0x110   : > { %v570_v26 = vadd.f32 %v569_v40, %v568_v17 }
 0x112   : > { %575 = vst.msk [vmem:[%s172_s5] sm:$0x1] %vm573_vm12, %v570_v26 }
 0x113   : > { %1238 = shalt.err (!%p1235_p3)
}
 0x114   : > { %s1239_s24 = scalar_lea.hbm %s2340_s8, 32  ;;  %s1243_s28 = scalar_lea.hbm %s2450_s3, 64 }
 0x115   : > { %p1240_p4 = scmp.ne.s32.totalorder %s2340_s8, %s1239_s24  ;;  %p1244_p9 = scmp.lt.u32.totalorder %s2340_s8, %s2450_s3 }
 0x116   : > { %p1245_p10 = scmp.lt.u32.totalorder %s1243_s28, %s1239_s24  ;;  %p1247_p12 = scmp.lt.u32.totalorder %s1239_s24, %s2340_s8 }
 0x117   : > { %p1241_p7 = pnand %p1240_p4, %p1345_p5 }
 0x118   : > { %p1246_p11 = por %p1245_p10, %p1244_p9 }
 0x119   : > { %p1242_p8 = pneg %p1241_p7 }
 0x11a   : > { %p1248_p13 = por %p1247_p12, %p1246_p11 }
 0x11c   : > { %p1249_p0 = pnand %p1248_p13, %p1242_p8 }
 0x11e   : > { %1252 = shalt.err (!%p1249_p0)
}
 0x11f   : > { %1177 = dma.vmem_to_hbm [thread:$0]  (%p1345_p5), %s955_s9, 32, %s2340_s8, %s936_s10   ;;  %vm543_vm13 = vcmask 130048  }
 0x120   : > { %s2364_s6 = scalar_lea.vmem %s2449_s2, %s1044_s26 }
 0x15c   : > { %v886_v47 = vpop.trf.xlu1 }
 0x15d   : > { %902 = vst.msk [vmem:[%s2364_s6 + $0x80] sm:$0xff] %vm543_vm13, %v886_v47 }
 0x160   : > { %v887_v55 = vpop.trf.xlu1 }
 0x161   : > { %903 = vst.msk [vmem:[%s2364_s6 + $0x88] sm:$0xff] %vm543_vm13, %v887_v55 }
 0x164   : > { %v888_v27 = vpop.trf.xlu1 }
 0x165   : > { %904 = vst.msk [vmem:[%s2364_s6 + $0x90] sm:$0xff] %vm543_vm13, %v888_v27 }
 0x168   : > { %v889_v56 = vpop.trf.xlu1 }
 0x169   : > { %905 = vst.msk [vmem:[%s2364_s6 + $0x98] sm:$0xff] %vm543_vm13, %v889_v56 }
 0x16c   : > { %v890_v12 = vpop.trf.xlu1 }
 0x16d   : > { %906 = vst.msk [vmem:[%s2364_s6 + $0xa0] sm:$0xff] %vm543_vm13, %v890_v12 }
 0x170   : > { %v891_v4 = vpop.trf.xlu1 }
 0x171   : > { %v527_v33 = vpop.trf.xlu0  ;;  %907 = vst.msk [vmem:[%s2364_s6 + $0xa8] sm:$0xff] %vm543_vm13, %v891_v4 }
 0x172   : > { %544 = vst.msk [vmem:[%s2364_s6] sm:$0xff] %vm543_vm13, %v527_v33 }
 0x174   : > { %v892_v19 = vpop.trf.xlu1 }
 0x175   : > { %v528_v20 = vpop.trf.xlu0  ;;  %908 = vst.msk [vmem:[%s2364_s6 + $0xb0] sm:$0xff] %vm543_vm13, %v892_v19 }
 0x176   : > { %545 = vst.msk [vmem:[%s2364_s6 + $0x8] sm:$0xff] %vm543_vm13, %v528_v20 }
 0x178   : > { %v893_v41 = vpop.trf.xlu1 }
 0x179   : > { %v529_v31 = vpop.trf.xlu0  ;;  %909 = vst.msk [vmem:[%s2364_s6 + $0xb8] sm:$0xff] %vm543_vm13, %v893_v41 }
 0x17a   : > { %546 = vst.msk [vmem:[%s2364_s6 + $0x10] sm:$0xff] %vm543_vm13, %v529_v31 }
 0x17c   : > { %v894_v45 = vpop.trf.xlu1 }
 0x17d   : > { %v530_v63 = vpop.trf.xlu0  ;;  %910 = vst.msk [vmem:[%s2364_s6 + $0xc0] sm:$0xff] %vm543_vm13, %v894_v45 }
 0x17e   : > { %547 = vst.msk [vmem:[%s2364_s6 + $0x18] sm:$0xff] %vm543_vm13, %v530_v63 }
 0x180   : > { %v895_v57 = vpop.trf.xlu1 }
 0x181   : > { %v531_v52 = vpop.trf.xlu0  ;;  %911 = vst.msk [vmem:[%s2364_s6 + $0xc8] sm:$0xff] %vm543_vm13, %v895_v57 }
 0x182   : > { %548 = vst.msk [vmem:[%s2364_s6 + $0x20] sm:$0xff] %vm543_vm13, %v531_v52 }
 0x184   : > { %v896_v48 = vpop.trf.xlu1 }
 0x185   : > { %v532_v44 = vpop.trf.xlu0  ;;  %912 = vst.msk [vmem:[%s2364_s6 + $0xd0] sm:$0xff] %vm543_vm13, %v896_v48 }
 0x186   : > { %549 = vst.msk [vmem:[%s2364_s6 + $0x28] sm:$0xff] %vm543_vm13, %v532_v44 }
 0x188   : > { %v897_v23 = vpop.trf.xlu1 }
 0x189   : > { %v533_v22 = vpop.trf.xlu0  ;;  %913 = vst.msk [vmem:[%s2364_s6 + $0xd8] sm:$0xff] %vm543_vm13, %v897_v23 }
 0x18a   : > { %550 = vst.msk [vmem:[%s2364_s6 + $0x30] sm:$0xff] %vm543_vm13, %v533_v22 }
 0x18c   : > { %v898_v29 = vpop.trf.xlu1 }
 0x18d   : > { %v534_v32 = vpop.trf.xlu0  ;;  %914 = vst.msk [vmem:[%s2364_s6 + $0xe0] sm:$0xff] %vm543_vm13, %v898_v29 }
 0x18e   : > { %551 = vst.msk [vmem:[%s2364_s6 + $0x38] sm:$0xff] %vm543_vm13, %v534_v32 }
 0x190   : > { %v899_v62 = vpop.trf.xlu1 }
 0x191   : > { %v535_v46 = vpop.trf.xlu0  ;;  %915 = vst.msk [vmem:[%s2364_s6 + $0xe8] sm:$0xff] %vm543_vm13, %v899_v62 }
 0x192   : > { %552 = vst.msk [vmem:[%s2364_s6 + $0x40] sm:$0xff] %vm543_vm13, %v535_v46 }
 0x194   : > { %v900_v21 = vpop.trf.xlu1 }
 0x195   : > { %v536_v34 = vpop.trf.xlu0  ;;  %916 = vst.msk [vmem:[%s2364_s6 + $0xf0] sm:$0xff] %vm543_vm13, %v900_v21 }
 0x196   : > { %553 = vst.msk [vmem:[%s2364_s6 + $0x48] sm:$0xff] %vm543_vm13, %v536_v34 }
 0x198   : > { %v901_v49 = vpop.trf.xlu1 }
 0x199   : > { %v537_v28 = vpop.trf.xlu0  ;;  %917 = vst.msk [vmem:[%s2364_s6 + $0xf8] sm:$0xff] %vm543_vm13, %v901_v49 }
 0x19a   : > { %554 = vst.msk [vmem:[%s2364_s6 + $0x50] sm:$0xff] %vm543_vm13, %v537_v28 }
 0x19d   : > { %v538_v61 = vpop.trf.xlu0 }
 0x19e   : > { %555 = vst.msk [vmem:[%s2364_s6 + $0x58] sm:$0xff] %vm543_vm13, %v538_v61 }
 0x1a1   : > { %v539_v10 = vpop.trf.xlu0 }
 0x1a2   : > { %556 = vst.msk [vmem:[%s2364_s6 + $0x60] sm:$0xff] %vm543_vm13, %v539_v10 }
 0x1a5   : > { %v540_v8 = vpop.trf.xlu0 }
 0x1a6   : > { %557 = vst.msk [vmem:[%s2364_s6 + $0x68] sm:$0xff] %vm543_vm13, %v540_v8 }
 0x1a9   : > { %v541_v16 = vpop.trf.xlu0 }
 0x1aa   : > { %558 = vst.msk [vmem:[%s2364_s6 + $0x70] sm:$0xff] %vm543_vm13, %v541_v16 }
 0x1ad   : > { %v542_v0 = vpop.trf.xlu0 }
 0x1ae   : > { %559 = vst.msk [vmem:[%s2364_s6 + $0x78] sm:$0xff] %vm543_vm13, %v542_v0 }
 0x1af PF: > { %p1183_p5 = scmp.ge.s32.totalorder %s1287_s15, 2  ;;  %s974_s22 = sand.u32 1, %s1275_s12  }
 0x1b0   : > { %s975_s25 = scalar_lea.sflag [#allocation3], %s974_s22 }
 0x1b1   : > { %p1180_p1 = pnand %p1183_p5, %p1349_p6 }
 0x1b3   : > { %1270 = dma.done.wait (!%p1180_p1), %s975_s25, 32  }
 0x1b4   : > { %1272 = vsyncadd (!%p1180_p1), %s975_s25, 4294967264  ;;  %p14_p2 = scmp.ge.s32.totalorder %s1333_s18, 4   ;;  %s2483_s12 = smov %s1279_s13 }
 0x1b5   : > { %s2484_s13 = smov %s1283_s14  ;;  %s2485_s14 = smov %s1343_s21 }
 0x1b6   : > { %s2486_s15 = smov %s1333_s18  ;;  %16 = sbr.rel (!%p14_p2) target bundleno = 3 (0x3), region = 106 }
 0x1bd   :  { %980 = vsyncpa [#allocation3], 1 }
 0x1be   :  { %982 = vsyncpa [#allocation3 + $0x1], 1 }

</bundles_post_ra>
